<compile_context>
chip_gen: v7x
topology: tpu7x:2x2x1
jax: 0.10.0
libtpu: 0.0.40
codegen_flags: <defaults>
</compile_context>

<pallas_src>
import functools

import jax
import jax.numpy as jnp
from jax.experimental import pallas as pl
from jax.experimental.pallas import tpu as pltpu

EPS = 1e-6


def _cold_diffusion_kernel(
    coef_ref, std_ref,                              # SMEM per-batch VPSDE scalars
    ids_ref, eps_ref, b1eff_ref,                    # per-tile ids / noise, per-batch fused bias
    wemb_ref, w1_ref, w2_ref, b2_ref, wdec_ref, bdec_ref,
    out_ref,                                        # (1, 1, 8, 128) per-(batch, outer) CE accumulator
    *, n_inner, seq_len,
):
    b = pl.program_id(0)
    to = pl.program_id(1)
    ti = pl.program_id(2)
    TM = ids_ref.shape[0]
    C = wemb_ref.shape[0]

    ids = ids_ref[...]                                              # (TM, 1) int32
    col = jax.lax.broadcasted_iota(jnp.int32, (TM, C), 1)

    # ---- one-hot + VPSDE.marginal_prob mixing: x_t = mean_coef*x0 + std*eps ----
    onehot = (col == ids).astype(jnp.float32)                       # (TM, C)
    x_noise = coef_ref[b] * onehot + std_ref[b] * eps_ref[...]      # f32 on the VPU

    # ---- embedding_layer (C -> H, no bias): bf16 MXU operands, f32 accumulate --
    h = jnp.dot(x_noise.astype(jnp.bfloat16), wemb_ref[...],
                preferred_element_type=jnp.float32)

    # ---- ToyScoreNetwork MLP: Linear -> SiLU -> Linear -------------------------
    # projected condition folded into the first bias: b1_eff = b1 + cond_h @ W1
    h1 = jnp.dot(h.astype(jnp.bfloat16), w1_ref[...],
                 preferred_element_type=jnp.float32) + b1eff_ref[0]
    h1 = h1 * jax.nn.sigmoid(h1)                                    # SiLU (f32, v5e-safe)
    h2 = jnp.dot(h1.astype(jnp.bfloat16), w2_ref[...],
                 preferred_element_type=jnp.float32) + b2_ref[...]

    # ---- decoder_layer (H -> C) -------------------------------------------------
    logits = jnp.dot(h2.astype(jnp.bfloat16), wdec_ref[...],
                     preferred_element_type=jnp.float32) + bdec_ref[...]

    # ---- per-token cross entropy (reduction='none'), summed over the tile -------
    m = jnp.max(logits, axis=-1, keepdims=True)
    lse = m + jnp.log(jnp.sum(jnp.exp(logits - m), axis=-1, keepdims=True))
    # recompute the one-hot here (shorter live range than holding it across matmuls)
    tgt = jnp.sum(logits * (col == ids).astype(jnp.float32),
                  axis=-1, keepdims=True)
    ce = lse - tgt                                                  # (TM, 1)

    if seq_len % TM != 0:
        # static branch: mask the padded tail tokens of each batch row
        tile_idx = to * n_inner + ti
        row = jax.lax.broadcasted_iota(jnp.int32, (TM, 1), 0)
        pos = tile_idx * TM + row
        ce = jnp.where(pos < seq_len, ce, 0.0)

    tile_sum = jnp.sum(ce)                                          # scalar f32

    @pl.when(ti == 0)
    def _():
        out_ref[...] = jnp.zeros_like(out_ref)
    out_ref[...] += tile_sum


def cold_diffusion_forward(input_ids, attention_mask, condition, params, *,
                           beta_min, beta_max, num_classes, rng):
    B, L = input_ids.shape
    C = num_classes
    H = params["w_emb"].shape[1]
    N = B * L

    # Token tile: 128 rows (C=H=32 << 128, so bigger tiles only add vreg spills).
    TM = 128
    n_t = pl.cdiv(L, TM)
    L_pad = n_t * TM
    # Split the token axis so both v7x TensorCores get work at small B.
    t_outer = 2 if (n_t % 2 == 0 and n_t >= 2) else 1
    t_inner = n_t // t_outer
    N_pad = B * L_pad

    k_t, k_eps = jax.random.split(rng)
    # timesteps = rand(B) * (1 - EPS) + EPS
    timesteps = jax.random.uniform(k_t, (B,), dtype=jnp.float32) * (1.0 - EPS) + EPS
    log_mean_coeff = (-0.25 * timesteps ** 2 * (beta_max - beta_min)
                      - 0.5 * timesteps * beta_min)
    mean_coef = jnp.exp(log_mean_coeff).astype(jnp.float32)            # (B,)
    std = jnp.sqrt(1.0 - jnp.exp(2.0 * log_mean_coeff)).astype(jnp.float32)

    # epsilon ~ N(0,1): drawn with jax.random (one XLA op) and streamed in.
    eps = jax.random.normal(k_eps, (B, L, C), jnp.float32)

    pad = L_pad - L
    ids_p = jnp.pad(input_ids.astype(jnp.int32), ((0, 0), (0, pad)))
    eps_p = jnp.pad(eps, ((0, 0), (0, pad), (0, 0)))
    # TODO(synk): ids stream is (N,1) int32 (lane-padded); low-priority relayout item.
    ids_f = ids_p.reshape(N_pad, 1)
    eps_f = eps_p.reshape(N_pad, C)

    # condition_proj_layer folded into the first MLP bias (all in f32):
    #   b1_eff[b] = b1 + (condition[b] @ W_cond + b_cond) @ W1
    cond_h = condition.astype(jnp.float32) @ params["w_cond"] + params["b_cond"]
    b1_eff = (cond_h @ params["w1"] + params["b1"]).reshape(B, 1, H)

    # bf16 weights for the MXU; biases stay f32 (added after f32 accumulation).
    w_emb = params["w_emb"].astype(jnp.bfloat16)
    w1 = params["w1"].astype(jnp.bfloat16)
    w2 = params["w2"].astype(jnp.bfloat16)
    w_dec = params["w_dec"].astype(jnp.bfloat16)

    smem = pl.BlockSpec(memory_space=pltpu.MemorySpace.SMEM)

    def weight(r, c):
        # Grid-invariant block (index_map always (0,0)); tiny at H=C=32.
        return pl.BlockSpec((r, c), lambda b, to, ti: (0, 0))

    def tile_map(b, to, ti):
        return (b * n_t + to * t_inner + ti, 0)

    cost = pl.CostEstimate(
        flops=2 * N_pad * (C * H + 2 * H * H + H * C),
        transcendentals=N_pad * (H + C),                 # sigmoid + softmax exp
        bytes_accessed=(N_pad * 4                        # ids
                        + N_pad * C * 4                  # epsilon stream
                        + B * H * 4                      # fused bias
                        + B * t_outer * 8 * 128 * 4      # loss accumulator
                        + 2 * (C * H + 2 * H * H + H * C)  # bf16 weights
                        + 4 * (H + C)),                  # f32 biases
    )

    kernel = functools.partial(_cold_diffusion_kernel,
                               n_inner=t_inner, seq_len=L)

    loss_acc = pl.pallas_call(
        kernel,
        out_shape=jax.ShapeDtypeStruct((B, t_outer, 8, 128), jnp.float32),
        grid=(B, t_outer, t_inner),
        in_specs=[
            smem,                                                  # mean_coef (B,)
            smem,                                                  # std (B,)
            pl.BlockSpec((TM, 1), tile_map),                       # ids
            pl.BlockSpec((TM, C), tile_map),                       # epsilon
            pl.BlockSpec((1, 1, H), lambda b, to, ti: (b, 0, 0)),  # b1_eff
            weight(C, H),                                          # w_emb
            weight(H, H),                                          # w1
            weight(H, H), weight(1, H),                            # w2, b2
            weight(H, C), weight(1, C),                            # w_dec, b_dec
        ],
        out_specs=pl.BlockSpec((1, 1, 8, 128), lambda b, to, ti: (b, to, 0, 0)),
        compiler_params=pltpu.CompilerParams(
            dimension_semantics=("parallel", "parallel", "arbitrary")),
        cost_estimate=cost,
    )(mean_coef, std, ids_f, eps_f, b1_eff,
      w_emb, w1, w2, params["b2"], w_dec, params["b_dec"])

    total_sum = jnp.sum(loss_acc[:, :, 0, 0])     # sum of per-token CE (padding masked)
    mask = attention_mask.reshape(-1).astype(jnp.float32)

    # Faithful to the original module: the elementwise masked loss is overwritten;
    # total_SDE_loss = mean over all tokens, masked_SDE_loss = total / mask.sum().
    total_SDE_loss = total_sum / N
    masked_SDE_loss = total_SDE_loss / jnp.sum(mask)
    SDE_loss = total_SDE_loss + masked_SDE_loss
    decoding_loss = 0.0
    return SDE_loss, decoding_loss


def init_params(key, *, hidden_dim, condition_dim, num_classes):
    ks = jax.random.split(key, 8)
    s = 0.02
    return {
        "w_cond": s * jax.random.normal(ks[0], (condition_dim, hidden_dim), jnp.float32),
        "b_cond": jnp.zeros((1, hidden_dim), jnp.float32),
        "w_emb":  s * jax.random.normal(ks[1], (num_classes, hidden_dim), jnp.float32),
        "w1":     s * jax.random.normal(ks[2], (hidden_dim, hidden_dim), jnp.float32),
        "b1":     jnp.zeros((1, hidden_dim), jnp.float32),
        "w2":     s * jax.random.normal(ks[3], (hidden_dim, hidden_dim), jnp.float32),
        "b2":     jnp.zeros((1, hidden_dim), jnp.float32),
        "w_dec":  s * jax.random.normal(ks[4], (hidden_dim, num_classes), jnp.float32),
        "b_dec":  jnp.zeros((1, num_classes), jnp.float32),
    }


if __name__ == "__main__":
    # Small shapes consistent with the module's forward pass.
    B, L = 2, 256
    hidden_dim = 32
    condition_dim = 16
    num_classes = 32
    beta_min, beta_max = 0.1, 20.0

    root = jax.random.PRNGKey(0)
    k_param, k_ids, k_cond, k_noise = jax.random.split(root, 4)

    params = init_params(k_param, hidden_dim=hidden_dim,
                         condition_dim=condition_dim, num_classes=num_classes)

    protein_seq_input_ids = jax.random.randint(k_ids, (B, L), 0, num_classes,
                                               dtype=jnp.int32)
    protein_seq_attention_mask = jnp.ones((B, L), jnp.int32).at[:, -16:].set(0)
    condition = jax.random.normal(k_cond, (B, condition_dim), jnp.float32)

    sde_loss, decoding_loss = cold_diffusion_forward(
        protein_seq_input_ids, protein_seq_attention_mask, condition, params,
        beta_min=beta_min, beta_max=beta_max, num_classes=num_classes,
        rng=k_noise)

    sde_loss = jax.block_until_ready(sde_loss)
    assert jnp.isfinite(sde_loss)
    print("KERNEL_OK")
</pallas_src>

<mosaic_0001>
module attributes {stable_mosaic.version = 11 : i64} {
  func.func @_cold_diffusion_kernel(%arg0: i32, %arg1: i32, %arg2: i32, %arg3: memref<2xf32, #tpu.memory_space<smem>>, %arg4: memref<2xf32, #tpu.memory_space<smem>>, %arg5: memref<128x1xi32, #tpu.memory_space<vmem>>, %arg6: memref<128x32xf32, #tpu.memory_space<vmem>>, %arg7: memref<1x1x32xf32, #tpu.memory_space<vmem>>, %arg8: memref<32x32xbf16, #tpu.memory_space<vmem>>, %arg9: memref<32x32xbf16, #tpu.memory_space<vmem>>, %arg10: memref<32x32xbf16, #tpu.memory_space<vmem>>, %arg11: memref<1x32xf32, #tpu.memory_space<vmem>>, %arg12: memref<32x32xbf16, #tpu.memory_space<vmem>>, %arg13: memref<1x32xf32, #tpu.memory_space<vmem>>, %arg14: memref<1x1x8x128xf32, #tpu.memory_space<vmem>>) attributes {dimension_semantics = [#tpu.dimension_semantics<parallel>, #tpu.dimension_semantics<parallel>, #tpu.dimension_semantics<arbitrary>], iteration_bounds = array<i64: 2, 2, 1>, scalar_prefetch = 0 : i64, scratch_operands = 0 : i64, tpu.core_type = #tpu.core_type<tc>, window_params = [{transform_indices = @transform_0, window_bounds = array<i64: 2>}, {transform_indices = @transform_1, window_bounds = array<i64: 2>}, {transform_indices = @transform_2, window_bounds = array<i64: 128, 1>}, {transform_indices = @transform_3, window_bounds = array<i64: 128, 32>}, {transform_indices = @transform_4, window_bounds = array<i64: 1, 1, 32>}, {pipeline_mode = #tpu.pipeline_mode<synchronous>, transform_indices = @transform_5, window_bounds = array<i64: 32, 32>}, {pipeline_mode = #tpu.pipeline_mode<synchronous>, transform_indices = @transform_6, window_bounds = array<i64: 32, 32>}, {pipeline_mode = #tpu.pipeline_mode<synchronous>, transform_indices = @transform_7, window_bounds = array<i64: 32, 32>}, {pipeline_mode = #tpu.pipeline_mode<synchronous>, transform_indices = @transform_8, window_bounds = array<i64: 1, 32>}, {pipeline_mode = #tpu.pipeline_mode<synchronous>, transform_indices = @transform_9, window_bounds = array<i64: 32, 32>}, {pipeline_mode = #tpu.pipeline_mode<synchronous>, transform_indices = @transform_10, window_bounds = array<i64: 1, 32>}, {transform_indices = @transform_11, window_bounds = array<i64: 1, 1, 8, 128>}]} {
    %c0 = arith.constant 0 : index
    %c0_0 = arith.constant 0 : index
    %0 = vector.load %arg5[%c0, %c0_0] : memref<128x1xi32, #tpu.memory_space<vmem>>, vector<128x1xi32>
    %1 = tpu.iota {dimensions = array<i32: 1>} : vector<128x32xi32>
    %2 = vector.broadcast %0 : vector<128x1xi32> to vector<128x32xi32>
    %3 = arith.cmpi eq, %1, %2 : vector<128x32xi32>
    %4 = arith.extui %3 : vector<128x32xi1> to vector<128x32xi32>
    %5 = arith.sitofp %4 : vector<128x32xi32> to vector<128x32xf32>
    %6 = arith.index_cast %arg0 : i32 to index
    %7 = memref.load %arg3[%6] : memref<2xf32, #tpu.memory_space<smem>>
    %8 = vector.broadcast %7 : f32 to vector<128x32xf32>
    %9 = arith.mulf %8, %5 : vector<128x32xf32>
    %10 = arith.index_cast %arg0 : i32 to index
    %11 = memref.load %arg4[%10] : memref<2xf32, #tpu.memory_space<smem>>
    %c0_1 = arith.constant 0 : index
    %c0_2 = arith.constant 0 : index
    %12 = vector.load %arg6[%c0_1, %c0_2] : memref<128x32xf32, #tpu.memory_space<vmem>>, vector<128x32xf32>
    %13 = vector.broadcast %11 : f32 to vector<128x32xf32>
    %14 = arith.mulf %13, %12 : vector<128x32xf32>
    %15 = arith.addf %9, %14 : vector<128x32xf32>
    %16 = arith.truncf %15 : vector<128x32xf32> to vector<128x32xbf16>
    %c0_3 = arith.constant 0 : index
    %c0_4 = arith.constant 0 : index
    %17 = vector.load %arg8[%c0_3, %c0_4] : memref<32x32xbf16, #tpu.memory_space<vmem>>, vector<32x32xbf16>
    %cst = arith.constant dense<0.000000e+00> : vector<128x32xf32>
    %18 = tpu.matmul %16, %17, %cst {dimension_numbers = #tpu.dot_dimension_numbers<[1], [0], [0], [1], [0, 0, 1, 1], [], []>} : vector<128x32xbf16>, vector<32x32xbf16>, vector<128x32xf32> -> vector<128x32xf32>
    %19 = arith.truncf %18 : vector<128x32xf32> to vector<128x32xbf16>
    %c0_5 = arith.constant 0 : index
    %c0_6 = arith.constant 0 : index
    %20 = vector.load %arg9[%c0_5, %c0_6] : memref<32x32xbf16, #tpu.memory_space<vmem>>, vector<32x32xbf16>
    %cst_7 = arith.constant dense<0.000000e+00> : vector<128x32xf32>
    %21 = tpu.matmul %19, %20, %cst_7 {dimension_numbers = #tpu.dot_dimension_numbers<[1], [0], [0], [1], [0, 0, 1, 1], [], []>} : vector<128x32xbf16>, vector<32x32xbf16>, vector<128x32xf32> -> vector<128x32xf32>
    %c0_8 = arith.constant 0 : index
    %c0_9 = arith.constant 0 : index
    %c0_10 = arith.constant 0 : index
    %22 = vector.load %arg7[%c0_8, %c0_9, %c0_10] : memref<1x1x32xf32, #tpu.memory_space<vmem>>, vector<1x1x32xf32>
    %23 = vector.shape_cast %22 : vector<1x1x32xf32> to vector<1x32xf32>
    %24 = vector.broadcast %23 : vector<1x32xf32> to vector<128x32xf32>
    %25 = arith.addf %21, %24 : vector<128x32xf32>
    %26 = arith.negf %25 : vector<128x32xf32>
    %27 = math.exp %26 : vector<128x32xf32>
    %cst_11 = arith.constant 1.000000e+00 : f32
    %28 = vector.broadcast %cst_11 : f32 to vector<128x32xf32>
    %29 = arith.addf %28, %27 : vector<128x32xf32>
    %30 = arith.divf %28, %29 : vector<128x32xf32>
    %31 = arith.mulf %25, %30 : vector<128x32xf32>
    %32 = arith.truncf %31 : vector<128x32xf32> to vector<128x32xbf16>
    %c0_12 = arith.constant 0 : index
    %c0_13 = arith.constant 0 : index
    %33 = vector.load %arg10[%c0_12, %c0_13] : memref<32x32xbf16, #tpu.memory_space<vmem>>, vector<32x32xbf16>
    %cst_14 = arith.constant dense<0.000000e+00> : vector<128x32xf32>
    %34 = tpu.matmul %32, %33, %cst_14 {dimension_numbers = #tpu.dot_dimension_numbers<[1], [0], [0], [1], [0, 0, 1, 1], [], []>} : vector<128x32xbf16>, vector<32x32xbf16>, vector<128x32xf32> -> vector<128x32xf32>
    %c0_15 = arith.constant 0 : index
    %c0_16 = arith.constant 0 : index
    %35 = vector.load %arg11[%c0_15, %c0_16] : memref<1x32xf32, #tpu.memory_space<vmem>>, vector<1x32xf32>
    %36 = vector.broadcast %35 : vector<1x32xf32> to vector<128x32xf32>
    %37 = arith.addf %34, %36 : vector<128x32xf32>
    %38 = arith.truncf %37 : vector<128x32xf32> to vector<128x32xbf16>
    %c0_17 = arith.constant 0 : index
    %c0_18 = arith.constant 0 : index
    %39 = vector.load %arg12[%c0_17, %c0_18] : memref<32x32xbf16, #tpu.memory_space<vmem>>, vector<32x32xbf16>
    %cst_19 = arith.constant dense<0.000000e+00> : vector<128x32xf32>
    %40 = tpu.matmul %38, %39, %cst_19 {dimension_numbers = #tpu.dot_dimension_numbers<[1], [0], [0], [1], [0, 0, 1, 1], [], []>} : vector<128x32xbf16>, vector<32x32xbf16>, vector<128x32xf32> -> vector<128x32xf32>
    %c0_20 = arith.constant 0 : index
    %c0_21 = arith.constant 0 : index
    %41 = vector.load %arg13[%c0_20, %c0_21] : memref<1x32xf32, #tpu.memory_space<vmem>>, vector<1x32xf32>
    %42 = vector.broadcast %41 : vector<1x32xf32> to vector<128x32xf32>
    %43 = arith.addf %40, %42 : vector<128x32xf32>
    %cst_22 = arith.constant dense<0xFF800000> : vector<128xf32>
    %44 = vector.multi_reduction <maximumf>, %43, %cst_22 [1] : vector<128x32xf32> to vector<128xf32>
    %45 = vector.shape_cast %44 : vector<128xf32> to vector<128x1xf32>
    %46 = vector.broadcast %45 : vector<128x1xf32> to vector<128x32xf32>
    %47 = arith.subf %43, %46 : vector<128x32xf32>
    %48 = math.exp %47 : vector<128x32xf32>
    %cst_23 = arith.constant dense<0.000000e+00> : vector<128xf32>
    %49 = vector.multi_reduction <add>, %48, %cst_23 [1] : vector<128x32xf32> to vector<128xf32>
    %50 = vector.shape_cast %49 : vector<128xf32> to vector<128x1xf32>
    %51 = math.log %50 : vector<128x1xf32>
    %52 = arith.addf %45, %51 : vector<128x1xf32>
    %53 = vector.broadcast %0 : vector<128x1xi32> to vector<128x32xi32>
    %54 = arith.cmpi eq, %1, %53 : vector<128x32xi32>
    %55 = arith.extui %54 : vector<128x32xi1> to vector<128x32xi32>
    %56 = arith.sitofp %55 : vector<128x32xi32> to vector<128x32xf32>
    %57 = arith.mulf %43, %56 : vector<128x32xf32>
    %cst_24 = arith.constant dense<0.000000e+00> : vector<128xf32>
    %58 = vector.multi_reduction <add>, %57, %cst_24 [1] : vector<128x32xf32> to vector<128xf32>
    %59 = vector.shape_cast %58 : vector<128xf32> to vector<128x1xf32>
    %60 = arith.subf %52, %59 : vector<128x1xf32>
    %61 = vector.shape_cast %60 : vector<128x1xf32> to vector<1x128x1xf32>
    %cst_25 = arith.constant dense<0.000000e+00> : vector<1xf32>
    %62 = vector.multi_reduction <add>, %61, %cst_25 [1, 2] : vector<1x128x1xf32> to vector<1xf32>
    %63 = vector.shape_cast %62 : vector<1xf32> to vector<1x1x1xf32>
    %64 = vector.extract %63[0, 0, 0] : f32 from vector<1x1x1xf32>
    %c0_i32 = arith.constant 0 : i32
    %65 = arith.cmpi eq, %arg2, %c0_i32 : i32
    %66 = arith.extui %65 : i1 to i32
    %c0_i32_26 = arith.constant 0 : i32
    %67 = arith.cmpi ne, %66, %c0_i32_26 : i32
    scf.if %67 {
      %cst_35 = arith.constant 0.000000e+00 : f32
      %72 = vector.broadcast %cst_35 : f32 to vector<1x1x8x128xf32>
      %c0_36 = arith.constant 0 : index
      %c0_37 = arith.constant 0 : index
      %c0_38 = arith.constant 0 : index
      %c0_39 = arith.constant 0 : index
      %73 = vector.load %arg14[%c0_36, %c0_37, %c0_38, %c0_39] : memref<1x1x8x128xf32, #tpu.memory_space<vmem>>, vector<1x1x8x128xf32>
      tpu.vector_store %arg14[%c0_36, %c0_37, %c0_38, %c0_39], %72 {strides = array<i32>} : memref<1x1x8x128xf32, #tpu.memory_space<vmem>>, vector<1x1x8x128xf32>,
    } else {
    }
    %c0_27 = arith.constant 0 : index
    %c0_28 = arith.constant 0 : index
    %c0_29 = arith.constant 0 : index
    %c0_30 = arith.constant 0 : index
    %68 = vector.load %arg14[%c0_27, %c0_28, %c0_29, %c0_30] : memref<1x1x8x128xf32, #tpu.memory_space<vmem>>, vector<1x1x8x128xf32>
    %69 = vector.broadcast %64 : f32 to vector<1x1x8x128xf32>
    %70 = arith.addf %68, %69 : vector<1x1x8x128xf32>
    %c0_31 = arith.constant 0 : index
    %c0_32 = arith.constant 0 : index
    %c0_33 = arith.constant 0 : index
    %c0_34 = arith.constant 0 : index
    %71 = vector.load %arg14[%c0_31, %c0_32, %c0_33, %c0_34] : memref<1x1x8x128xf32, #tpu.memory_space<vmem>>, vector<1x1x8x128xf32>
    tpu.vector_store %arg14[%c0_31, %c0_32, %c0_33, %c0_34], %70 {strides = array<i32>} : memref<1x1x8x128xf32, #tpu.memory_space<vmem>>, vector<1x1x8x128xf32>,
    return
  }
  func.func @transform_0(%arg0: i32, %arg1: i32, %arg2: i32) -> i32 {
    %c0_i32 = arith.constant 0 : i32
    %c0_i32_0 = arith.constant 0 : i32
    return %c0_i32 : i32
  }
  func.func @transform_1(%arg0: i32, %arg1: i32, %arg2: i32) -> i32 {
    %c0_i32 = arith.constant 0 : i32
    %c0_i32_0 = arith.constant 0 : i32
    return %c0_i32 : i32
  }
  func.func @transform_2(%arg0: i32, %arg1: i32, %arg2: i32) -> (i32, i32) {
    %c2_i32 = arith.constant 2 : i32
    %0 = arith.muli %arg0, %c2_i32 : i32
    %c1_i32 = arith.constant 1 : i32
    %1 = arith.muli %arg1, %c1_i32 : i32
    %2 = arith.addi %0, %1 : i32
    %3 = arith.addi %2, %arg2 : i32
    %c0_i32 = arith.constant 0 : i32
    %c0_i32_0 = arith.constant 0 : i32
    return %3, %c0_i32 : i32, i32
  }
  func.func @transform_3(%arg0: i32, %arg1: i32, %arg2: i32) -> (i32, i32) {
    %c2_i32 = arith.constant 2 : i32
    %0 = arith.muli %arg0, %c2_i32 : i32
    %c1_i32 = arith.constant 1 : i32
    %1 = arith.muli %arg1, %c1_i32 : i32
    %2 = arith.addi %0, %1 : i32
    %3 = arith.addi %2, %arg2 : i32
    %c0_i32 = arith.constant 0 : i32
    %c0_i32_0 = arith.constant 0 : i32
    return %3, %c0_i32 : i32, i32
  }
  func.func @transform_4(%arg0: i32, %arg1: i32, %arg2: i32) -> (i32, i32, i32) {
    %c0_i32 = arith.constant 0 : i32
    %c0_i32_0 = arith.constant 0 : i32
    %c0_i32_1 = arith.constant 0 : i32
    return %arg0, %c0_i32, %c0_i32_0 : i32, i32, i32
  }
  func.func @transform_5(%arg0: i32, %arg1: i32, %arg2: i32) -> (i32, i32) {
    %c0_i32 = arith.constant 0 : i32
    %c0_i32_0 = arith.constant 0 : i32
    %c0_i32_1 = arith.constant 0 : i32
    return %c0_i32, %c0_i32_0 : i32, i32
  }
  func.func @transform_6(%arg0: i32, %arg1: i32, %arg2: i32) -> (i32, i32) {
    %c0_i32 = arith.constant 0 : i32
    %c0_i32_0 = arith.constant 0 : i32
    %c0_i32_1 = arith.constant 0 : i32
    return %c0_i32, %c0_i32_0 : i32, i32
  }
  func.func @transform_7(%arg0: i32, %arg1: i32, %arg2: i32) -> (i32, i32) {
    %c0_i32 = arith.constant 0 : i32
    %c0_i32_0 = arith.constant 0 : i32
    %c0_i32_1 = arith.constant 0 : i32
    return %c0_i32, %c0_i32_0 : i32, i32
  }
  func.func @transform_8(%arg0: i32, %arg1: i32, %arg2: i32) -> (i32, i32) {
    %c0_i32 = arith.constant 0 : i32
    %c0_i32_0 = arith.constant 0 : i32
    %c0_i32_1 = arith.constant 0 : i32
    return %c0_i32, %c0_i32_0 : i32, i32
  }
  func.func @transform_9(%arg0: i32, %arg1: i32, %arg2: i32) -> (i32, i32) {
    %c0_i32 = arith.constant 0 : i32
    %c0_i32_0 = arith.constant 0 : i32
    %c0_i32_1 = arith.constant 0 : i32
    return %c0_i32, %c0_i32_0 : i32, i32
  }
  func.func @transform_10(%arg0: i32, %arg1: i32, %arg2: i32) -> (i32, i32) {
    %c0_i32 = arith.constant 0 : i32
    %c0_i32_0 = arith.constant 0 : i32
    %c0_i32_1 = arith.constant 0 : i32
    return %c0_i32, %c0_i32_0 : i32, i32
  }
  func.func @transform_11(%arg0: i32, %arg1: i32, %arg2: i32) -> (i32, i32, i32, i32) {
    %c0_i32 = arith.constant 0 : i32
    %c0_i32_0 = arith.constant 0 : i32
    %c0_i32_1 = arith.constant 0 : i32
    return %arg0, %arg1, %c0_i32, %c0_i32_0 : i32, i32, i32, i32
  }
}

</mosaic_0001>

<bundles_post_ra>
// kernel: tpu_custom_call.1
= control target key start
LH: loop header
LB: loop body
LE: loop exit
PB: predicated region body
PF: predicated region fallthrough
CT: control target
= control target key end

     0   :  { %16 = vsyncpa [#allocation4], 0  ;;  %s3233_s0 = inlined_call_operand.vmem [shape: f32[2], index: 0, kind: input, shape index: {}]   ;;  %s3234_s1 = inlined_call_operand.vmem [shape: f32[2], index: 1, kind: input, shape index: {}]   ;;  %s3235_s2 = inlined_call_operand.vmem [shape: s32[512,1], index: 2, kind: input, shape index: {}]   ;;  %s3236_s3 = inlined_call_operand.vmem [shape: f32[512,32], index: 3, kind: input, shape index: {}]   ;;  %s3237_s4 = inlined_call_operand.vmem [shape: f32[2,1,32], index: 4, kind: input, shape index: {}]   ;;  %s3238_s5 = inlined_call_operand.vmem [shape: bf16[32,32], index: 5, kind: input, shape index: {}]   ;;  %s3239_s6 = inlined_call_operand.vmem [shape: bf16[32,32], index: 6, kind: input, shape index: {}]   ;;  %s3240_s7 = inlined_call_operand.vmem [shape: bf16[32,32], index: 7, kind: input, shape index: {}]   ;;  %s3241_s8 = inlined_call_operand.vmem [shape: f32[1,32], index: 8, kind: input, shape index: {}]   ;;  %s3242_s9 = inlined_call_operand.vmem [shape: bf16[32,32], index: 9, kind: input, shape index: {}]   ;;  %s3243_s10 = inlined_call_operand.vmem [shape: f32[1,32], index: 10, kind: input, shape index: {}]   ;;  %s3244_s11 = inlined_call_operand.hbm [shape: f32[2,2,8,128], index: 11, kind: output, shape index: {}]  }
   0x1   :  { %17 = vsyncpa [#allocation6], 0 }
   0x2   :  { %18 = vsyncpa [#allocation3], 0 }
   0x3   :  { %20 = vsyncpa [#allocation3 + $0x1], 0  ;;  %s2519_s17 = smov 0   ;;  %s2521_s18 = smov 0  }
   0x4   :  { %s2523_s19 = smov 0   ;;  %s2525_s20 = smov 0  }
   0x5   :  { %s2527_s21 = smov 0   ;;  %s2529_s22 = smov 0  }
   0x6   :  { %s2531_s23 = smov 0   ;;  %s2533_s24 = smov 0  }
   0x7 LB: > { %3254 = sst [smem:[#allocation11_spill]] %s2424_s17  ;;  %s1866_s25 = sadd.s32 4294967295, %s2452_s24   ;;  %s2452_s24 = sphi %s2533_s24, %s26_s24   ;;  %s2448_s23 = sphi %s2531_s23, %s3278_s23   ;;  %s2444_s22 = sphi %s2529_s22, %s3272_s22   ;;  %s2440_s21 = sphi %s2527_s21, %s3277_s21   ;;  %s2436_s20 = sphi %s2525_s20, %s3271_s20   ;;  %s2432_s19 = sphi %s2523_s19, %s3276_s19   ;;  %s2428_s18 = sphi %s2521_s18, %s3275_s18   ;;  %s2424_s17 = sphi %s2519_s17, %s3274_s17  }
   0x8   : > { %3255 = sst [smem:[#allocation12_spill]] %s2444_s22  ;;  %s1867_s26 = sadd.s32 4294967294, %s2452_s24  }
   0x9   : > { %s41_s27 = sadd.s32 1, %s2444_s22  ;;  %s45_s28 = sadd.s32 1, %s2448_s23 }
   0xa   : > { %p43_p0 = scmp.ge.s32.totalorder %s41_s27, 2  ;;  %s312_s29 = sadd.s32 1, %s2432_s19 }
   0xb   : > { %p322_p1 = scmp.ne.s32.totalorder %s2432_s19, %s2428_s18  ;;  %p323_p2 = scmp.eq.s32.totalorder %s1866_s25, 3 }
   0xc   : > { %s3280_s27 = smov (%p43_p0, %s41_s27), 0  ;;  %s3282_s28 = smov (!%p43_p0, %s45_s28), %s2448_s23 }
   0xd   : > { %3256 = sst [smem:[#allocation13_spill]] %s3280_s27  ;;  %s308_s30 = ssub.s32 %s2444_s22, %s3280_s27 }
   0xe   : > { %p2571_p3 = por %p323_p2, %p322_p1  ;;  %p47_p4 = scmp.ge.s32.totalorder %s3282_s28, 2 }
   0xf   : > { %p328_p5 = scmp.ne.s32.totalorder %s2428_s18, %s2424_s17  ;;  %p329_p6 = scmp.eq.s32.totalorder %s1867_s26, 3 }
  0x10   : > { %s3257_s12 = scalar_select %p2571_p3, 1, 0 }
  0x11   : > { %p1872_p7 = scmp.ge.s32.totalorder %s2452_s24, 1  ;;  %s3284_s28 = smov (%p47_p4, %s3282_s28), 0 }
  0x12   : > { %3258 = sst [smem:[#allocation14_spill]] %s3284_s28  ;;  %p2580_p8 = por %p329_p6, %p328_p5 }
  0x13   : > { %p336_p9 = scmp.lt.s32.totalorder %s2452_s24, 5  ;;  %s307_s14 = ssub.s32 %s2448_s23, %s3284_s28 }
  0x14   : > { %s3259_s13 = scalar_select %p2580_p8, 1, 0 }
  0x15   : > { %s309_s15 = sor.u32 %s308_s30, %s307_s14  ;;  %p2587_p10 = pnand %p1872_p7, %p336_p9 }
  0x16   : > { %3260 = sst [smem:[#allocation15_spill]] %s3259_s13  ;;  %p310_p11 = scmp.eq.s32.totalorder %s309_s15, 0 }
  0x17   : > { %s3261_s16 = scalar_select %p2587_p10, 1, 0 }
  0x18   : > { %p2591_p12 = scmp.eq.s32.totalorder %s1866_s25, 0  ;;  %p2098_p13 = pneg %p2587_p10 }
  0x19   : > { %s349_s13 = sshll.u32 %s3233_s0, 4  ;;  %s360_s15 = sshll.u32 %s3234_s1, 4  ;;  %s350_s13 = int_to_ptr.vmem [resolvable:$true] %s349_s13  ;;  %s361_s15 = int_to_ptr.vmem [resolvable:$true] %s360_s15 }
  0x1a   : > { %s3262_s27 = scalar_select %p2591_p12, 1, 0 }
  0x1b   : > { %s2601_s17 = scalar_select %p310_p11, %s2432_s19, %s312_s29  }
  0x1c   : > { %p2605_p0 = pnand %p2591_p12, %p2098_p13  ;;  %s2320_s28 = scalar_lea.vmem %s350_s13, 16 }
  0x1d   : > { %p2321_p1 = scmp.ne.s32.totalorder %s350_s13, %s2320_s28  ;;  %p2328_p6 = scmp.lt.s32.totalorder %s350_s13, %s350_s13 }
  0x1e   : > { %p2322_p2 = pneg %p2605_p0  ;;  %p2329_p7 = scmp.lt.s32.totalorder %s2320_s28, %s2320_s28 }
  0x20   : > { %p2323_p4 = pnand %p2322_p2, %p2321_p1  ;;  %p2330_p9 = por %p2329_p7, %p2328_p6 }
  0x22   : > { %p2324_p5 = pneg %p2323_p4 }
  0x24   : > { %p2331_p11 = pnand %p2330_p9, %p2324_p5 }
  0x26   : > { %2334 = shalt.err (!%p2331_p11)
}
  0x27   : > { %s2454_s22 = smov [#allocation2]   ;;  %s2335_s29 = scalar_lea.vmem %s361_s15, 16 }
  0x28   : > { %2101 = dma.vmem_to_smem (!%p2605_p0), %s350_s13, 16, %s2454_s22, [#allocation4]  }
  0x29   : > { %p2336_p13 = scmp.ne.s32.totalorder %s361_s15, %s2335_s29  ;;  %p2343_p12 = scmp.lt.s32.totalorder %s361_s15, %s361_s15 }
  0x2a   : > { %p2344_p10 = scmp.lt.s32.totalorder %s2335_s29, %s2335_s29 }
  0x2b   : > { %p2338_p8 = pnand %p2336_p13, %p2322_p2 }
  0x2c   : > { %p2345_p1 = por %p2344_p10, %p2343_p12 }
  0x2d   : > { %p2339_p3 = pneg %p2338_p8 }
  0x2f   : > { %p2346_p4 = pnand %p2345_p1, %p2339_p3 }
  0x31   : > { %2349 = shalt.err (!%p2346_p4)
}
  0x32   : > { %s2455_s26 = smov [#allocation5]   ;;  %p3264_p5 = scmp.ne.s32.totalorder %s3261_s16, 0 }
  0x33   : > { %2104 = dma.vmem_to_smem (!%p2605_p0), %s361_s15, 16, %s2455_s26, [#allocation6]  }
  0x34   : > { %427 = sbr.rel (%p3264_p5) target bundleno = 1705 (0x6a9), region = 64  ;;  %p3265_p6 = scmp.ne.s32.totalorder (!%p3264_p5), %s3262_s27, 0 }
  0x3b   : > { %2411 = dma.done.wait (%p3265_p6), [#allocation4], 16  }
  0x3c   : > { %2413 = vsyncadd (%p3265_p6), [#allocation4], 4294967280 }
  0x3d   : > { %2415 = dma.done.wait (%p3265_p6), [#allocation6], 16  }
  0x3e   : > { %2417 = vsyncadd (%p3265_p6), [#allocation6], 4294967280 }
  0x3f   : > { %437 = sfence }
  0x40   : > { %s1880_s28 = sshll.u32 %s2440_s21, 1  ;;  %v2456_v0 = vmov 0   ;;  %v2184_v7 = vld [vmem:[%s3238_s5] sm:$0xff]   ;;  %v2185_v8 = vld [vmem:[%s3238_s5 + $0x8] sm:$0xff]   ;;  %v530_v20 = vlaneseq  ;;  %s628_s27 = sld [smem:[#allocation2 + %s2440_s21]]  ;;  %v2457_v28 = vmov 0.0  }
  0x41   : > { %2183 = vset.pattern.permute.xlu1 %v2456_v0  ;;  %2182 = vset.pattern.permute.xlu0 %v2456_v0  ;;  %s2630_s13 = sadd.s32 %s2436_s20, %s1880_s28  ;;  %v2186_v19 = vld [vmem:[%s3239_s6] sm:$0xff]   ;;  %s646_s14 = sld [smem:[#allocation5 + %s2440_s21]]  ;;  %vm720_vm6 = vcmask 261120  }
  0x42   : > { %s1881_s16 = sshll.u32 %s2630_s13, 4  ;;  %2006 = vmatprep.subr.bf16.mxu0 %v2184_v7  ;;  %2026 = vmatprep.subr.bf16.mxu1 %v2186_v19  ;;  %v2670_v21 = vand.u32 127, %v530_v20  ;;  %p510_p8 = scmp.lt.s32.totalorder %s2440_s21, 1 }
  0x43   : > { %p490_p3 = scmp.lt.s32.totalorder %s1881_s16, 63  ;;  %2007 = vmatpush3.bf16.msra.mxu0 %v2184_v7  ;;  %2027 = vmatpush3.bf16.msra.mxu1 %v2186_v19  ;;  %s483_s28 = sand.u32 1, %s2428_s18  }
  0x44   : > { %2008 = vmatprep.subr.bf16.mxu0 %v2185_v8  ;;  %s3288_s21 = smov (!%p510_p8, %s2440_s21), 1  ;;  %p3266_p12 = scmp.ne.s32.totalorder %s3257_s12, 0 }
  0x45   : > { %s3286_s16 = smov (!%p490_p3, %s1881_s16), 63 }
  0x46   : > { %s1882_s30 = sshll.u32 %s3286_s16, 3  ;;  %v2679_v24 = vstv %s628_s27  ;;  %s1879_s27 = sshll.u32 %s483_s28, 3 }
  0x47   : > { %s2641_s25 = scalar_lea.vmem %s3235_s2, %s1882_s30  ;;  %2009 = vmatpush3.bf16.msra.mxu0 %v2185_v8  ;;  %s2677_s22 = scalar_lea.vmem %s3236_s3, %s1882_s30  ;;  %v2682_v26 = vstv %s646_s14 }
  0x48   : > { %v516_v1 = vld [vmem:[%s2641_s25 + $0x10] sm:$0xff]  ;;  %v514_v2 = vld [vmem:[%s2641_s25] sm:$0xff]  ;;  %v517_v3 = vld [vmem:[%s2641_s25 + $0x18] sm:$0xff]  ;;  %s512_s30 = scalar_lea.vmem %s3237_s4, %s3288_s21  ;;  %s1963_s14 = sshll.u32 %s2630_s13, 7 }
  0x49   : > { %539 = vperm.xlu1 %2183, %v516_v1   ;;  %533 = vperm.xlu0 %2182, %v514_v2   ;;  %v515_v4 = vld [vmem:[%s2641_s25 + $0x8] sm:$0xff]  ;;  %v518_v6 = vld [vmem:[%s2641_s25 + $0x20] sm:$0xff]  ;;  %v521_v9 = vld [vmem:[%s2641_s25 + $0x38] sm:$0xff]  ;;  %s485_s20 = scalar_lea.vmem [#allocation7], %s1879_s27  ;;  %s3180_s21 = scalar_lea.hbm %s3244_s11, %s1963_s14 }
  0x4a   : > { %v519_v5 = vld [vmem:[%s2641_s25 + $0x28] sm:$0xff]  ;;  %v520_v10 = vld [vmem:[%s2641_s25 + $0x30] sm:$0xff]  ;;  %v522_v12 = vld [vmem:[%s2641_s25 + $0x40] sm:$0xff]  ;;  %s1748_s15 = sshll.u32 %s485_s20, 4  ;;  %s2458_s13 = smov [#allocation7]   ;;  %s3182_s15 = int_to_ptr.vmem [resolvable:$true] %s1748_s15 }
  0x4b   : > { %v523_v11 = vld [vmem:[%s2641_s25 + $0x48] sm:$0xff]  ;;  %v525_v13 = vld [vmem:[%s2641_s25 + $0x58] sm:$0xff]  ;;  %v524_v14 = vld [vmem:[%s2641_s25 + $0x50] sm:$0xff]  ;;  %s2350_s29 = scalar_lea.vmem %s3182_s15, 128  ;;  %s2354_s26 = sshll.u32 %s2458_s13, 4  ;;  %s2355_s26 = int_to_ptr.vmem [resolvable:$false] %s2354_s26 }
  0x4c   : > { %v527_v15 = vld [vmem:[%s2641_s25 + $0x68] sm:$0xff]  ;;  %v526_v16 = vld [vmem:[%s2641_s25 + $0x60] sm:$0xff]  ;;  %v529_v17 = vld [vmem:[%s2641_s25 + $0x78] sm:$0xff]  ;;  %p2351_p10 = scmp.ne.s32.totalorder %s3182_s15, %s2350_s29  ;;  %s2356_s27 = scalar_lea.vmem %s2355_s26, 256 }
  0x4d   : > { %542 = vperm.xlu1 %2183, %v517_v3   ;;  %536 = vperm.xlu0 %2182, %v515_v4   ;;  %v528_v18 = vld [vmem:[%s2641_s25 + $0x70] sm:$0xff]  ;;  %v647_v27 = vld [vmem:[%s2677_s22] sm:$0xff]  ;;  %v650_v31 = vld [vmem:[%s2677_s22 + $0x18] sm:$0xff]  ;;  %s1733_s25 = scalar_lea.sflag [#allocation3], %s483_s28  ;;  %p2357_p7 = scmp.lt.s32.totalorder %s3182_s15, %s2355_s26 }
  0x4e   : > { %v649_v25 = vld [vmem:[%s2677_s22 + $0x10] sm:$0xff]  ;;  %v648_v32 = vld [vmem:[%s2677_s22 + $0x8] sm:$0xff]  ;;  %v664_v38 = vmul.f32 %v2682_v26, %v647_v27  ;;  %v667_v39 = vmul.f32 %v2682_v26, %v650_v31  ;;  %v651_v41 = vld [vmem:[%s2677_s22 + $0x20] sm:$0xff]  ;;  %p2352_p0 = pnand %p2351_p10, %p3266_p12  ;;  %p2358_p9 = scmp.lt.s32.totalorder %s2356_s27, %s2350_s29 }
  0x4f   : > { %v666_v33 = vmul.f32 %v2682_v26, %v649_v25  ;;  %v652_v40 = vld [vmem:[%s2677_s22 + $0x28] sm:$0xff]  ;;  %v665_v42 = vmul.f32 %v2682_v26, %v648_v32  ;;  %v668_v50 = vmul.f32 %v2682_v26, %v651_v41  ;;  %v654_v54 = vld [vmem:[%s2677_s22 + $0x38] sm:$0xff]  ;;  %v653_v55 = vld [vmem:[%s2677_s22 + $0x30] sm:$0xff] }
  0x50   : > { %v669_v48 = vmul.f32 %v2682_v26, %v652_v40  ;;  %v671_v63 = vmul.f32 %v2682_v26, %v654_v54  ;;  %v670_v1 = vmul.f32 %v2682_v26, %v653_v55  ;;  %v657_v19 = vld [vmem:[%s2677_s22 + $0x50] sm:$0xff]  ;;  %p2353_p2 = pneg %p2352_p0  ;;  %p2359_p11 = por %p2358_p9, %p2357_p7 }
  0x51   : > { %548 = vperm.xlu1 %2183, %v519_v5   ;;  %545 = vperm.xlu0 %2182, %v518_v6   ;;  %v656_v5 = vld [vmem:[%s2677_s22 + $0x48] sm:$0xff]  ;;  %v655_v6 = vld [vmem:[%s2677_s22 + $0x40] sm:$0xff] }
  0x52   : > { %p2360_p13 = pnand %p2359_p11, %p2353_p2 }
  0x55   : > { %554 = vperm.xlu1 %2183, %v521_v9   ;;  %551 = vperm.xlu0 %2182, %v520_v10  }
  0x59   : > { %560 = vperm.xlu1 %2183, %v523_v11   ;;  %557 = vperm.xlu0 %2182, %v522_v12   ;;  %v673_v12 = vmul.f32 %v2682_v26, %v656_v5 }
  0x5d   : > { %566 = vperm.xlu1 %2183, %v525_v13   ;;  %563 = vperm.xlu0 %2182, %v524_v14   ;;  %v672_v14 = vmul.f32 %v2682_v26, %v655_v6 }
  0x61   : > { %572 = vperm.xlu1 %2183, %v527_v15   ;;  %569 = vperm.xlu0 %2182, %v526_v16  }
  0x65   : > { %578 = vperm.xlu1 %2183, %v529_v17   ;;  %575 = vperm.xlu0 %2182, %v528_v18   ;;  %v658_v18 = vld [vmem:[%s2677_s22 + $0x58] sm:$0xff] }
  0x66   : > { %v675_v31 = vmul.f32 %v2682_v26, %v658_v18 }
  0xc8   : > { %v540_v22 = vpop.permute.xlu1 %539  ;;  %v534_v23 = vpop.permute.xlu0 %533 }
  0xc9   : > { %vm582_vm0 = vcmp.eq.s32.totalorder %v2670_v21, %v540_v22  ;;  %vm580_vm1 = vcmp.eq.s32.totalorder %v2670_v21, %v534_v23 }
  0xca   : > { %v2688_v29 = vsel %vm582_vm0, 1.0, %v2457_v28  ;;  %v2691_v30 = vsel %vm580_vm1, 1.0, %v2457_v28  ;;  %vm1682_vm1 = vcmask 7168  }
  0xcb   : > { %v632_v34 = vmul.f32 %v2688_v29, %v2679_v24  ;;  %v630_v35 = vmul.f32 %v2691_v30, %v2679_v24 }
  0xcc   : > { %v543_v36 = vpop.permute.xlu1 %542  ;;  %v537_v37 = vpop.permute.xlu0 %536 }
  0xcd   : > { %vm583_vm2 = vcmp.eq.s32.totalorder %v2670_v21, %v543_v36  ;;  %vm581_vm3 = vcmp.eq.s32.totalorder %v2670_v21, %v537_v37  ;;  %v682_v47 = vadd.f32 %v666_v33, %v632_v34  ;;  %v680_v52 = vadd.f32 %v664_v38, %v630_v35  ;;  %v660_v37 = vld [vmem:[%s2677_s22 + $0x68] sm:$0xff]  ;;  %v659_v38 = vld [vmem:[%s2677_s22 + $0x60] sm:$0xff] }
  0xce   : > { %v2708_v43 = vsel %vm583_vm2, 1.0, %v2457_v28  ;;  %v2711_v44 = vsel %vm581_vm3, 1.0, %v2457_v28  ;;  %v674_v33 = vmul.f32 %v2682_v26, %v657_v19 }
  0xcf   : > { %v633_v45 = vmul.f32 %v2708_v43, %v2679_v24  ;;  %v631_v46 = vmul.f32 %v2711_v44, %v2679_v24 }
  0xd0   : > { %v549_v49 = vpop.permute.xlu1 %548  ;;  %v546_v51 = vpop.permute.xlu0 %545 }
  0xd1   : > { %v683_v53 = vadd.f32 %v667_v39, %v633_v45  ;;  %vm585_vm4 = vcmp.eq.s32.totalorder %v2670_v21, %v549_v49  ;;  %vm584_vm5 = vcmp.eq.s32.totalorder %v2670_v21, %v546_v51  ;;  %v681_v56 = vadd.f32 %v665_v42, %v631_v46 }
  0xd2   : > { %v2724_v57 = vsel %vm585_vm4, 1.0, %v2457_v28  ;;  %v2727_v58 = vsel %vm584_vm5, 1.0, %v2457_v28  ;;  %v677_v46 = vmul.f32 %v2682_v26, %v660_v37 }
  0xd3   : > { %v697_v59 = vpack.c.bf16 %v683_v53, %v682_v47  ;;  %v635_v60 = vmul.f32 %v2724_v57, %v2679_v24  ;;  %v634_v61 = vmul.f32 %v2727_v58, %v2679_v24  ;;  %v696_v62 = vpack.c.bf16 %v681_v56, %v680_v52  ;;  %v662_v52 = vld [vmem:[%s2677_s22 + $0x78] sm:$0xff]  ;;  %v661_v53 = vld [vmem:[%s2677_s22 + $0x70] sm:$0xff] }
  0xd4   : > { %v555_v0 = vpop.permute.xlu1 %554  ;;  %v552_v2 = vpop.permute.xlu0 %551 }
  0xd5   : > { %v685_v3 = vadd.f32 %v669_v48, %v635_v60  ;;  %v684_v4 = vadd.f32 %v668_v50, %v634_v61  ;;  %vm587_vm7 = vcmp.eq.s32.totalorder %v2670_v21, %v555_v0  ;;  %vm586_vm8 = vcmp.eq.s32.totalorder %v2670_v21, %v552_v2  ;;  %2010 = vmatprep.mubr.msk.bf16.mxu0 %vm720_vm6, %v696_v62 }
  0xd6   : > { %v2741_v7 = vsel %vm587_vm7, 1.0, %v2457_v28  ;;  %v2744_v8 = vsel %vm586_vm8, 1.0, %v2457_v28  ;;  %2011 = vmatmul.mubr.msk.bf16.vlgmr.msra.gmra.mrb[0].mxu0 %vm720_vm6, %v697_v59  ;;  %v676_v48 = vmul.f32 %v2682_v26, %v659_v38  ;;  %v679_v61 = vmul.f32 %v2682_v26, %v662_v52 }
  0xd7   : > { %v698_v9 = vpack.c.bf16 %v685_v3, %v684_v4  ;;  %v637_v10 = vmul.f32 %v2741_v7, %v2679_v24  ;;  %v636_v11 = vmul.f32 %v2744_v8, %v2679_v24 }
  0xd8   : > { %v561_v13 = vpop.permute.xlu1 %560  ;;  %v558_v15 = vpop.permute.xlu0 %557 }
  0xd9   : > { %v687_v16 = vadd.f32 %v671_v63, %v637_v10  ;;  %v686_v17 = vadd.f32 %v670_v1, %v636_v11  ;;  %vm589_vm9 = vcmp.eq.s32.totalorder %v2670_v21, %v561_v13  ;;  %vm588_vm10 = vcmp.eq.s32.totalorder %v2670_v21, %v558_v15  ;;  %2014 = vmatprep.mubr.msk.bf16.mxu0 %vm720_vm6, %v698_v9 }
  0xda   : > { %v2759_v20 = vsel %vm589_vm9, 1.0, %v2457_v28  ;;  %v2762_v22 = vsel %vm588_vm10, 1.0, %v2457_v28  ;;  %v678_v63 = vmul.f32 %v2682_v26, %v661_v53 }
  0xdb   : > { %v699_v23 = vpack.c.bf16 %v687_v16, %v686_v17  ;;  %v639_v25 = vmul.f32 %v2759_v20, %v2679_v24  ;;  %v638_v27 = vmul.f32 %v2762_v22, %v2679_v24 }
  0xdc   : > { %v567_v32 = vpop.permute.xlu1 %566  ;;  %v564_v34 = vpop.permute.xlu0 %563 }
  0xdd   : > { %v689_v35 = vadd.f32 %v673_v12, %v639_v25  ;;  %v688_v36 = vadd.f32 %v672_v14, %v638_v27  ;;  %vm591_vm11 = vcmp.eq.s32.totalorder %v2670_v21, %v567_v32  ;;  %vm590_vm12 = vcmp.eq.s32.totalorder %v2670_v21, %v564_v34 }
  0xde   : > { %v2775_v39 = vsel %vm591_vm11, 1.0, %v2457_v28  ;;  %v2778_v40 = vsel %vm590_vm12, 1.0, %v2457_v28  ;;  %2015 = vmatmul.mubr.msk.bf16.gmra.mrb[4].mxu0 %vm720_vm6, %v699_v23 }
  0xdf   : > { %v700_v41 = vpack.c.bf16 %v689_v35, %v688_v36  ;;  %v641_v42 = vmul.f32 %v2775_v39, %v2679_v24  ;;  %v640_v45 = vmul.f32 %v2778_v40, %v2679_v24 }
  0xe0   : > { %v573_v47 = vpop.permute.xlu1 %572  ;;  %v570_v49 = vpop.permute.xlu0 %569 }
  0xe1   : > { %v691_v50 = vadd.f32 %v675_v31, %v641_v42  ;;  %v690_v51 = vadd.f32 %v674_v33, %v640_v45  ;;  %vm593_vm13 = vcmp.eq.s32.totalorder %v2670_v21, %v573_v47  ;;  %vm592_vm14 = vcmp.eq.s32.totalorder %v2670_v21, %v570_v49  ;;  %2018 = vmatprep.mubr.msk.bf16.mxu0 %vm720_vm6, %v700_v41  ;;  %v2189_v47 = vld [vmem:[%s3240_s7 + $0x8] sm:$0xff]  }
  0xe2   : > { %v2793_v54 = vsel %vm593_vm13, 1.0, %v2457_v28  ;;  %v2796_v55 = vsel %vm592_vm14, 1.0, %v2457_v28  ;;  %v2191_v49 = vld [vmem:[%s3242_s9 + $0x8] sm:$0xff]  }
  0xe3   : > { %v701_v56 = vpack.c.bf16 %v691_v50, %v690_v51  ;;  %v643_v59 = vmul.f32 %v2793_v54, %v2679_v24  ;;  %v642_v60 = vmul.f32 %v2796_v55, %v2679_v24  ;;  %v2847_v50 = vld [vmem:[%s512_s30] ss:$0 sm:$0xff] }
  0xe4   : > { %v579_v62 = vpop.permute.xlu1 %578  ;;  %v576_v0 = vpop.permute.xlu0 %575 }
  0xe5   : > { %v693_v1 = vadd.f32 %v677_v46, %v643_v59  ;;  %v692_v2 = vadd.f32 %v676_v48, %v642_v60  ;;  %vm595_vm15 = vcmp.eq.s32.totalorder %v2670_v21, %v579_v62  ;;  %vm594_vm0 = vcmp.eq.s32.totalorder %v2670_v21, %v576_v0  ;;  %v2188_v46 = vld [vmem:[%s3240_s7] sm:$0xff]  }
  0xe6   : > { %v2807_v3 = vsel %vm595_vm15, 1.0, %v2457_v28  ;;  %v2810_v4 = vsel %vm594_vm0, 1.0, %v2457_v28  ;;  %2019 = vmatmul.mubr.msk.bf16.gmra.mrb[8].mxu0 %vm720_vm6, %v701_v56  ;;  %v2187_v28 = vld [vmem:[%s3239_s6 + $0x8] sm:$0xff]   ;;  %2046 = vmatprep.subr.bf16.mxu0 %v2188_v46  ;;  %v2190_v48 = vld [vmem:[%s3242_s9] sm:$0xff]  }
  0xe7   : > { %v702_v5 = vpack.c.bf16 %v693_v1, %v692_v2  ;;  %v645_v6 = vmul.f32 %v2807_v3, %v2679_v24  ;;  %v644_v26 = vmul.f32 %v2810_v4, %v2679_v24  ;;  %2028 = vmatprep.subr.bf16.mxu1 %v2187_v28  ;;  %2047 = vmatpush3.bf16.msra.mxu0 %v2188_v46 }
  0xe8   : > { %2029 = vmatpush3.bf16.msra.mxu1 %v2187_v28  ;;  %2048 = vmatprep.subr.bf16.mxu0 %v2189_v47 }
  0xe9   : > { %v695_v9 = vadd.f32 %v679_v61, %v645_v6  ;;  %v694_v10 = vadd.f32 %v678_v63, %v644_v26  ;;  %2022 = vmatprep.mubr.msk.bf16.mxu0 %vm720_vm6, %v702_v5  ;;  %2066 = vmatprep.subr.bf16.mxu1 %v2190_v48 }
  0xeb   : > { %v703_v21 = vpack.c.bf16 %v695_v9, %v694_v10  ;;  %2049 = vmatpush3.bf16.msra.mxu0 %v2189_v47 }
  0xee   : > { %2023 = vmatmul.mubr.msk.bf16.gmra.mrb[12].mxu0 %vm720_vm6, %v703_v21 }
 0x1a9   : > { %v2012_v11 = vpop.f32.mrb[0].mxu0 }
 0x1aa   : > { %v779_v12 = vpop.f32.mrb[1].mxu0 }
 0x1ab   : > { %v2013_v13 = vpop.f32.mrb[2].mxu0 }
 0x1ac   : > { %v843_v14 = vpack.c.bf16 %v2013_v13, %v2012_v11  ;;  %v782_v15 = vpop.f32.mrb[3].mxu0 }
 0x1ad   : > { %v842_v16 = vpack.c.bf16 %v782_v15, %v779_v12 }
 0x1af   : > { %2030 = vmatprep.mubr.msk.bf16.mxu1 %vm720_vm6, %v842_v16 }
 0x1b0   : > { %2031 = vmatmul.mubr.msk.bf16.vlgmr.msra.gmra.mrb[0].mxu1 %vm720_vm6, %v843_v14 }
 0x1b1   : > { %v2016_v24 = vpop.f32.mrb[4].mxu0  ;;  %2067 = vmatpush3.bf16.msra.mxu1 %v2190_v48 }
 0x1b2   : > { %v795_v17 = vpop.f32.mrb[5].mxu0  ;;  %2068 = vmatprep.subr.bf16.mxu1 %v2191_v49 }
 0x1b3   : > { %v2017_v18 = vpop.f32.mrb[6].mxu0 }
 0x1b4   : > { %v845_v19 = vpack.c.bf16 %v2017_v18, %v2016_v24  ;;  %v798_v23 = vpop.f32.mrb[7].mxu0 }
 0x1b5   : > { %v844_v25 = vpack.c.bf16 %v798_v23, %v795_v17  ;;  %2069 = vmatpush3.bf16.msra.mxu1 %v2191_v49 }
 0x1b7   : > { %2034 = vmatprep.mubr.msk.bf16.mxu1 %vm720_vm6, %v844_v25 }
 0x1b8   : > { %2035 = vmatmul.mubr.msk.bf16.gmra.mrb[4].mxu1 %vm720_vm6, %v845_v19 }
 0x1b9   : > { %v2020_v27 = vpop.f32.mrb[8].mxu0 }
 0x1ba   : > { %v811_v31 = vpop.f32.mrb[9].mxu0 }
 0x1bb   : > { %v2021_v32 = vpop.f32.mrb[10].mxu0 }
 0x1bc   : > { %v847_v33 = vpack.c.bf16 %v2021_v32, %v2020_v27  ;;  %v814_v34 = vpop.f32.mrb[11].mxu0 }
 0x1bd   : > { %v846_v35 = vpack.c.bf16 %v814_v34, %v811_v31 }
 0x1bf   : > { %2038 = vmatprep.mubr.msk.bf16.mxu1 %vm720_vm6, %v846_v35 }
 0x1c0   : > { %2039 = vmatmul.mubr.msk.bf16.gmra.mrb[8].mxu1 %vm720_vm6, %v847_v33 }
 0x1c1   : > { %v2024_v36 = vpop.f32.mrb[12].mxu0 }
 0x1c2   : > { %v827_v37 = vpop.f32.mrb[13].mxu0 }
 0x1c3   : > { %v2025_v38 = vpop.f32.mrb[14].mxu0 }
 0x1c4   : > { %v849_v41 = vpack.c.bf16 %v2025_v38, %v2024_v36  ;;  %v830_v42 = vpop.f32.mrb[15].mxu0 }
 0x1c5   : > { %v848_v45 = vpack.c.bf16 %v830_v42, %v827_v37 }
 0x1c7   : > { %2042 = vmatprep.mubr.msk.bf16.mxu1 %vm720_vm6, %v848_v45 }
 0x1c8   : > { %2043 = vmatmul.mubr.msk.bf16.gmra.mrb[12].mxu1 %vm720_vm6, %v849_v41 }
 0x283   : > { %v2032_v51 = vpop.f32.mrb[0].mxu1 }
 0x284   : > { %v2850_v52 = vadd.f32 %v2032_v51, %v2847_v50  ;;  %v931_v53 = vpop.f32.mrb[1].mxu1 }
 0x285   : > { %v2853_v56 = vadd.f32 %v2847_v50, %v931_v53  ;;  %v2033_v59 = vpop.f32.mrb[2].mxu1 }
 0x286   : > { %v1925_v60 = vmul.f32 -1.442695, %v2850_v52  ;;  %v2857_v61 = vadd.f32 %v2033_v59, %v2847_v50  ;;  %v934_v62 = vpop.f32.mrb[3].mxu1 }
 0x287   : > { %v1923_v63 = vmul.f32 -1.442695, %v2853_v56  ;;  %v2861_v0 = vadd.f32 %v2847_v50, %v934_v62 }
 0x288   : > { %2192 = vpow2.f32 %v1925_v60  ;;  %v1926_v1 = vmul.f32 -1.442695, %v2857_v61 }
 0x289   : > { %2194 = vpow2.f32 %v1923_v63  ;;  %v1924_v2 = vmul.f32 -1.442695, %v2861_v0 }
 0x28a   : > { %2196 = vpow2.f32 %v1926_v1 }
 0x28b   : > { %2198 = vpow2.f32 %v1924_v2  ;;  %v2036_v5 = vpop.f32.mrb[4].mxu1 }
 0x28c   : > { %v2866_v6 = vadd.f32 %v2036_v5, %v2847_v50  ;;  %v947_v26 = vpop.f32.mrb[5].mxu1 }
 0x28d   : > { %v2869_v9 = vadd.f32 %v2847_v50, %v947_v26  ;;  %v2037_v10 = vpop.f32.mrb[6].mxu1 }
 0x28e   : > { %v1929_v21 = vmul.f32 -1.442695, %v2866_v6  ;;  %v2873_v28 = vadd.f32 %v2037_v10, %v2847_v50  ;;  %v950_v11 = vpop.f32.mrb[7].mxu1 }
 0x28f   : > { %v1927_v12 = vmul.f32 -1.442695, %v2869_v9  ;;  %v2877_v13 = vadd.f32 %v2847_v50, %v950_v11 }
 0x290   : > { %2200 = vpow2.f32 %v1929_v21  ;;  %v1930_v14 = vmul.f32 -1.442695, %v2873_v28 }
 0x291   : > { %2202 = vpow2.f32 %v1927_v12  ;;  %v1928_v15 = vmul.f32 -1.442695, %v2877_v13 }
 0x292   : > { %v2193_v16 = vpop.eup %2192  ;;  %2204 = vpow2.f32 %v1930_v14 }
 0x293   : > { %v2195_v24 = vpop.eup %2194  ;;  %v1044_v17 = vadd.f32 1.0, %v2193_v16  ;;  %2206 = vpow2.f32 %v1928_v15  ;;  %v2040_v18 = vpop.f32.mrb[8].mxu1 }
 0x294   : > { %v2197_v19 = vpop.eup %2196  ;;  %v1042_v23 = vadd.f32 1.0, %v2195_v24  ;;  %v2882_v25 = vadd.f32 %v2040_v18, %v2847_v50  ;;  %v963_v27 = vpop.f32.mrb[9].mxu1 }
 0x295   : > { %v2199_v31 = vpop.eup %2198  ;;  %2208 = vrcp.f32 %v1044_v17  ;;  %v1045_v32 = vadd.f32 1.0, %v2197_v19  ;;  %v2885_v33 = vadd.f32 %v2847_v50, %v963_v27  ;;  %v2041_v34 = vpop.f32.mrb[10].mxu1 }
 0x296   : > { %2210 = vrcp.f32 %v1042_v23  ;;  %v1043_v35 = vadd.f32 1.0, %v2199_v31  ;;  %v1933_v36 = vmul.f32 -1.442695, %v2882_v25  ;;  %v2889_v37 = vadd.f32 %v2041_v34, %v2847_v50  ;;  %v966_v38 = vpop.f32.mrb[11].mxu1 }
 0x297   : > { %2212 = vrcp.f32 %v1045_v32  ;;  %v1931_v41 = vmul.f32 -1.442695, %v2885_v33  ;;  %v2893_v42 = vadd.f32 %v2847_v50, %v966_v38 }
 0x298   : > { %2214 = vrcp.f32 %v1043_v35  ;;  %v1934_v45 = vmul.f32 -1.442695, %v2889_v37 }
 0x299   : > { %2216 = vpow2.f32 %v1933_v36  ;;  %v1932_v46 = vmul.f32 -1.442695, %v2893_v42 }
 0x29a   : > { %v2201_v47 = vpop.eup %2200  ;;  %2218 = vpow2.f32 %v1931_v41 }
 0x29b   : > { %v2203_v48 = vpop.eup %2202  ;;  %v1048_v49 = vadd.f32 1.0, %v2201_v47  ;;  %2220 = vpow2.f32 %v1934_v45  ;;  %v2044_v51 = vpop.f32.mrb[12].mxu1 }
 0x29c   : > { %v2205_v53 = vpop.eup %2204  ;;  %v1046_v59 = vadd.f32 1.0, %v2203_v48  ;;  %2222 = vpow2.f32 %v1932_v46  ;;  %v2898_v60 = vadd.f32 %v2044_v51, %v2847_v50  ;;  %v979_v62 = vpop.f32.mrb[13].mxu1 }
 0x29d   : > { %v2207_v63 = vpop.eup %2206  ;;  %2224 = vrcp.f32 %v1048_v49  ;;  %v1049_v1 = vadd.f32 1.0, %v2205_v53  ;;  %v2901_v2 = vadd.f32 %v2847_v50, %v979_v62  ;;  %v2045_v5 = vpop.f32.mrb[14].mxu1 }
 0x29e   : > { %2226 = vrcp.f32 %v1046_v59  ;;  %v1047_v26 = vadd.f32 1.0, %v2207_v63  ;;  %v1937_v10 = vmul.f32 -1.442695, %v2898_v60  ;;  %v2905_v21 = vadd.f32 %v2045_v5, %v2847_v50  ;;  %v982_v11 = vpop.f32.mrb[15].mxu1 }
 0x29f   : > { %v2209_v12 = vpop.eup %2208  ;;  %2228 = vrcp.f32 %v1049_v1  ;;  %v1935_v14 = vmul.f32 -1.442695, %v2901_v2  ;;  %v2909_v15 = vadd.f32 %v2847_v50, %v982_v11 }
 0x2a0   : > { %v2211_v16 = vpop.eup %2210  ;;  %2230 = vrcp.f32 %v1047_v26  ;;  %v1938_v24 = vmul.f32 -1.442695, %v2905_v21  ;;  %v1092_v23 = vmul.f32 %v2209_v12, %v2850_v52 }
 0x2a1   : > { %v2213_v17 = vpop.eup %2212  ;;  %2232 = vpow2.f32 %v1937_v10  ;;  %v1936_v18 = vmul.f32 -1.442695, %v2909_v15  ;;  %v1090_v32 = vmul.f32 %v2211_v16, %v2853_v56 }
 0x2a2   : > { %v2215_v19 = vpop.eup %2214  ;;  %v1093_v27 = vmul.f32 %v2213_v17, %v2857_v61  ;;  %2234 = vpow2.f32 %v1935_v14 }
 0x2a3   : > { %v2217_v31 = vpop.eup %2216  ;;  %v1091_v50 = vmul.f32 %v2215_v19, %v2861_v0  ;;  %2236 = vpow2.f32 %v1938_v24 }
 0x2a4   : > { %v2219_v34 = vpop.eup %2218  ;;  %v1107_v35 = vpack.c.bf16 %v1093_v27, %v1092_v23  ;;  %v1052_v36 = vadd.f32 1.0, %v2217_v31  ;;  %2238 = vpow2.f32 %v1936_v18 }
 0x2a5   : > { %v2221_v38 = vpop.eup %2220  ;;  %v1106_v41 = vpack.c.bf16 %v1091_v50, %v1090_v32  ;;  %v1050_v45 = vadd.f32 1.0, %v2219_v34 }
 0x2a6   : > { %v2223_v46 = vpop.eup %2222  ;;  %2240 = vrcp.f32 %v1052_v36  ;;  %v1053_v47 = vadd.f32 1.0, %v2221_v38 }
 0x2a7   : > { %v2225_v52 = vpop.eup %2224  ;;  %2242 = vrcp.f32 %v1050_v45  ;;  %v1051_v61 = vadd.f32 1.0, %v2223_v46  ;;  %2050 = vmatprep.mubr.msk.bf16.mxu0 %vm720_vm6, %v1106_v41  ;;  %v1939_v41 = vld [vmem:[%s3241_s8] ss:$0 sm:$0xff] }
 0x2a8   : > { %v2227_v48 = vpop.eup %2226  ;;  %2244 = vrcp.f32 %v1053_v47  ;;  %2051 = vmatmul.mubr.msk.bf16.vlgmr.msra.gmra.mrb[16].mxu0 %vm720_vm6, %v1107_v35  ;;  %v1096_v49 = vmul.f32 %v2225_v52, %v2866_v6 }
 0x2a9   : > { %v2229_v56 = vpop.eup %2228  ;;  %2246 = vrcp.f32 %v1051_v61  ;;  %v1094_v59 = vmul.f32 %v2227_v48, %v2869_v9 }
 0x2aa   : > { %v2231_v0 = vpop.eup %2230  ;;  %v1097_v51 = vmul.f32 %v2229_v56, %v2873_v28 }
 0x2ab   : > { %v2233_v53 = vpop.eup %2232  ;;  %v1095_v62 = vmul.f32 %v2231_v0, %v2877_v13 }
 0x2ac   : > { %v2235_v63 = vpop.eup %2234  ;;  %v1109_v1 = vpack.c.bf16 %v1097_v51, %v1096_v49  ;;  %v1056_v5 = vadd.f32 1.0, %v2233_v53 }
 0x2ad   : > { %v2237_v26 = vpop.eup %2236  ;;  %v1108_v10 = vpack.c.bf16 %v1095_v62, %v1094_v59  ;;  %v1054_v11 = vadd.f32 1.0, %v2235_v63 }
 0x2ae   : > { %v2239_v12 = vpop.eup %2238  ;;  %2248 = vrcp.f32 %v1056_v5  ;;  %v1057_v14 = vadd.f32 1.0, %v2237_v26 }
 0x2af   : > { %2250 = vrcp.f32 %v1054_v11  ;;  %v1055_v16 = vadd.f32 1.0, %v2239_v12  ;;  %2054 = vmatprep.mubr.msk.bf16.mxu0 %vm720_vm6, %v1108_v10 }
 0x2b0   : > { %v2241_v6 = vpop.eup %2240  ;;  %2252 = vrcp.f32 %v1057_v14  ;;  %2055 = vmatmul.mubr.msk.bf16.gmra.mrb[20].mxu0 %vm720_vm6, %v1109_v1 }
 0x2b1   : > { %v2243_v9 = vpop.eup %2242  ;;  %2254 = vrcp.f32 %v1055_v16  ;;  %v1100_v24 = vmul.f32 %v2241_v6, %v2882_v25 }
 0x2b2   : > { %v2245_v28 = vpop.eup %2244  ;;  %v1098_v18 = vmul.f32 %v2243_v9, %v2885_v33 }
 0x2b3   : > { %v2247_v13 = vpop.eup %2246  ;;  %v1101_v17 = vmul.f32 %v2245_v28, %v2889_v37 }
 0x2b4   : > { %v1099_v19 = vmul.f32 %v2247_v13, %v2893_v42 }
 0x2b5   : > { %v1111_v23 = vpack.c.bf16 %v1101_v17, %v1100_v24 }
 0x2b6   : > { %v1110_v27 = vpack.c.bf16 %v1099_v19, %v1098_v18 }
 0x2b8   : > { %v2249_v31 = vpop.eup %2248  ;;  %2058 = vmatprep.mubr.msk.bf16.mxu0 %vm720_vm6, %v1110_v27 }
 0x2b9   : > { %v2251_v32 = vpop.eup %2250  ;;  %2059 = vmatmul.mubr.msk.bf16.gmra.mrb[24].mxu0 %vm720_vm6, %v1111_v23  ;;  %v1104_v35 = vmul.f32 %v2249_v31, %v2898_v60 }
 0x2ba   : > { %v2253_v50 = vpop.eup %2252  ;;  %v1102_v37 = vmul.f32 %v2251_v32, %v2901_v2 }
 0x2bb   : > { %v2255_v34 = vpop.eup %2254  ;;  %v1105_v25 = vmul.f32 %v2253_v50, %v2905_v21 }
 0x2bc   : > { %v1103_v33 = vmul.f32 %v2255_v34, %v2909_v15  ;;  %v1950_v34 = vld [vmem:[%s3243_s10] ss:$0 sm:$0xff] }
 0x2bd   : > { %v1113_v36 = vpack.c.bf16 %v1105_v25, %v1104_v35 }
 0x2be   : > { %v1112_v42 = vpack.c.bf16 %v1103_v33, %v1102_v37 }
 0x2c0   : > { %2062 = vmatprep.mubr.msk.bf16.mxu0 %vm720_vm6, %v1112_v42 }
 0x2c1   : > { %2063 = vmatmul.mubr.msk.bf16.gmra.mrb[28].mxu0 %vm720_vm6, %v1113_v36 }
 0x37b   : > { %v2052_v38 = vpop.f32.mrb[16].mxu0 }
 0x37c   : > { %v1195_v45 = vpop.f32.mrb[17].mxu0  ;;  %v1204_v60 = vadd.f32 %v2052_v38, %v1939_v41 }
 0x37d   : > { %v2053_v46 = vpop.f32.mrb[18].mxu0  ;;  %v1196_v52 = vadd.f32 %v1939_v41, %v1195_v45 }
 0x37e   : > { %v1207_v47 = vadd.f32 %v2053_v46, %v1939_v41  ;;  %v1198_v21 = vpop.f32.mrb[19].mxu0 }
 0x37f   : > { %v1199_v2 = vadd.f32 %v1939_v41, %v1198_v21 }
 0x380   : > { %v1259_v61 = vpack.c.bf16 %v1207_v47, %v1204_v60 }
 0x381   : > { %v1258_v15 = vpack.c.bf16 %v1199_v2, %v1196_v52 }
 0x383   : > { %v2056_v48 = vpop.f32.mrb[20].mxu0  ;;  %2070 = vmatprep.mubr.msk.bf16.mxu1 %vm720_vm6, %v1258_v15 }
 0x384   : > { %v1211_v56 = vpop.f32.mrb[21].mxu0  ;;  %2071 = vmatmul.mubr.msk.bf16.vlgmr.msra.gmra.mrb[16].mxu1 %vm720_vm6, %v1259_v61  ;;  %v1220_v49 = vadd.f32 %v2056_v48, %v1939_v41 }
 0x385   : > { %v2057_v0 = vpop.f32.mrb[22].mxu0  ;;  %v1212_v59 = vadd.f32 %v1939_v41, %v1211_v56 }
 0x386   : > { %v1223_v51 = vadd.f32 %v2057_v0, %v1939_v41  ;;  %v1214_v53 = vpop.f32.mrb[23].mxu0 }
 0x387   : > { %v1215_v62 = vadd.f32 %v1939_v41, %v1214_v53 }
 0x388   : > { %v1261_v63 = vpack.c.bf16 %v1223_v51, %v1220_v49 }
 0x389   : > { %v1260_v1 = vpack.c.bf16 %v1215_v62, %v1212_v59 }
 0x38b   : > { %2074 = vmatprep.mubr.msk.bf16.mxu1 %vm720_vm6, %v1260_v1 }
 0x38c   : > { %v2060_v5 = vpop.f32.mrb[24].mxu0  ;;  %2075 = vmatmul.mubr.msk.bf16.gmra.mrb[20].mxu1 %vm720_vm6, %v1261_v63 }
 0x38d   : > { %v1227_v26 = vpop.f32.mrb[25].mxu0  ;;  %v1236_v11 = vadd.f32 %v2060_v5, %v1939_v41 }
 0x38e   : > { %v2061_v10 = vpop.f32.mrb[26].mxu0  ;;  %v1228_v16 = vadd.f32 %v1939_v41, %v1227_v26 }
 0x38f   : > { %v1239_v12 = vadd.f32 %v2061_v10, %v1939_v41  ;;  %v1230_v14 = vpop.f32.mrb[27].mxu0 }
 0x390   : > { %v1231_v6 = vadd.f32 %v1939_v41, %v1230_v14 }
 0x391   : > { %v1263_v9 = vpack.c.bf16 %v1239_v12, %v1236_v11 }
 0x392   : > { %v1262_v28 = vpack.c.bf16 %v1231_v6, %v1228_v16 }
 0x394   : > { %v2064_v13 = vpop.f32.mrb[28].mxu0  ;;  %2078 = vmatprep.mubr.msk.bf16.mxu1 %vm720_vm6, %v1262_v28 }
 0x395   : > { %v1243_v24 = vpop.f32.mrb[29].mxu0  ;;  %2079 = vmatmul.mubr.msk.bf16.gmra.mrb[24].mxu1 %vm720_vm6, %v1263_v9  ;;  %v1252_v18 = vadd.f32 %v2064_v13, %v1939_v41 }
 0x396   : > { %v2065_v17 = vpop.f32.mrb[30].mxu0  ;;  %v1244_v27 = vadd.f32 %v1939_v41, %v1243_v24 }
 0x397   : > { %v1255_v19 = vadd.f32 %v2065_v17, %v1939_v41  ;;  %v1246_v23 = vpop.f32.mrb[31].mxu0 }
 0x398   : > { %v1247_v31 = vadd.f32 %v1939_v41, %v1246_v23 }
 0x399   : > { %v1265_v32 = vpack.c.bf16 %v1255_v19, %v1252_v18 }
 0x39a   : > { %v1264_v50 = vpack.c.bf16 %v1247_v31, %v1244_v27 }
 0x39c   : > { %2082 = vmatprep.mubr.msk.bf16.mxu1 %vm720_vm6, %v1264_v50 }
 0x39d   : > { %2083 = vmatmul.mubr.msk.bf16.gmra.mrb[28].mxu1 %vm720_vm6, %v1265_v32 }
 0x457   : > { %v2072_v35 = vpop.f32.mrb[16].mxu1 }
 0x458   : > { %v1347_v25 = vpop.f32.mrb[17].mxu1  ;;  %v2953_v42 = vadd.f32 %v2072_v35, %v1950_v34 }
 0x459   : > { %v2951_v37 = vadd.f32 %v1950_v34, %v1347_v25  ;;  %v2073_v33 = vpop.f32.mrb[18].mxu1 }
 0x45a   : > { %v1350_v36 = vpop.f32.mrb[19].mxu1  ;;  %v2961_v46 = vadd.f32 %v2073_v33, %v1950_v34  ;;  %v1416_v47 = vsel %vm720_vm6, %v2953_v42, -inf }
 0x45b   : > { %v2955_v38 = vadd.f32 %v1950_v34, %v1350_v36  ;;  %v1410_v41 = vsel %vm720_vm6, %v2951_v37, -inf  ;;  %v1602_v33 = vmul.f32 %v2691_v30, %v2951_v37  ;;  %v1604_v36 = vmul.f32 %v2688_v29, %v2953_v42 }
 0x45c   : > { %1411 = vmax.xlane.f32.xlu0 %v1410_v41  ;;  %v1419_v0 = vsel %vm720_vm6, %v2961_v46, -inf }
 0x45d   : > { %v1413_v45 = vsel %vm720_vm6, %v2955_v38, -inf  ;;  %v1603_v35 = vmul.f32 %v2711_v44, %v2955_v38  ;;  %v1618_v41 = vsel %vm720_vm6, %v1602_v33, 0.0  ;;  %v1605_v44 = vmul.f32 %v2708_v43, %v2961_v46 }
 0x45e   : > { %1414 = vmax.xlane.f32.xlu1 %v1413_v45  ;;  %v1624_v45 = vsel %vm720_vm6, %v1604_v36, 0.0 }
 0x45f   : > { %v2076_v60 = vpop.f32.mrb[20].mxu1 }
 0x460   : > { %v1363_v21 = vpop.f32.mrb[21].mxu1  ;;  %1417 = vmax.xlane.f32.xlu0 %v1416_v47  ;;  %v2967_v15 = vadd.f32 %v2076_v60, %v1950_v34  ;;  %v1627_v60 = vsel %vm720_vm6, %v1605_v44, 0.0 }
 0x461   : > { %v2965_v52 = vadd.f32 %v1950_v34, %v1363_v21  ;;  %v2077_v2 = vpop.f32.mrb[22].mxu1 }
 0x462   : > { %v1366_v61 = vpop.f32.mrb[23].mxu1  ;;  %v2975_v49 = vadd.f32 %v2077_v2, %v1950_v34  ;;  %v1428_v51 = vsel %vm720_vm6, %v2967_v15, -inf }
 0x463   : > { %v2969_v48 = vadd.f32 %v1950_v34, %v1366_v61  ;;  %v1422_v56 = vsel %vm720_vm6, %v2965_v52, -inf }
 0x464   : > { %1423 = vmax.xlane.f32.xlu1 %v1422_v56  ;;  %1420 = vmax.xlane.f32.xlu0 %v1419_v0  ;;  %v1431_v26 = vsel %vm720_vm6, %v2975_v49, -inf }
 0x465   : > { %v1425_v53 = vsel %vm720_vm6, %v2969_v48, -inf }
 0x468   : > { %v2080_v59 = vpop.f32.mrb[24].mxu1  ;;  %1429 = vmax.xlane.f32.xlu1 %v1428_v51  ;;  %1426 = vmax.xlane.f32.xlu0 %v1425_v53 }
 0x469   : > { %v1379_v62 = vpop.f32.mrb[25].mxu1  ;;  %v2985_v10 = vadd.f32 %v2080_v59, %v1950_v34 }
 0x46a   : > { %v2981_v63 = vadd.f32 %v1950_v34, %v1379_v62  ;;  %v2081_v1 = vpop.f32.mrb[26].mxu1 }
 0x46b   : > { %v1382_v5 = vpop.f32.mrb[27].mxu1  ;;  %v2991_v14 = vadd.f32 %v2081_v1, %v1950_v34  ;;  %v1440_v9 = vsel %vm720_vm6, %v2985_v10, -inf }
 0x46c   : > { %v2987_v11 = vadd.f32 %v1950_v34, %v1382_v5  ;;  %v1434_v12 = vsel %vm720_vm6, %v2981_v63, -inf  ;;  %1432 = vmax.xlane.f32.xlu0 %v1431_v26 }
 0x46d   : > { %1435 = vmax.xlane.f32.xlu1 %v1434_v12  ;;  %v1443_v18 = vsel %vm720_vm6, %v2991_v14, -inf }
 0x46e   : > { %v1437_v16 = vsel %vm720_vm6, %v2987_v11, -inf }
 0x470   : > { %v2084_v6 = vpop.f32.mrb[28].mxu1  ;;  %1438 = vmax.xlane.f32.xlu0 %v1437_v16 }
 0x471   : > { %1441 = vmax.xlane.f32.xlu1 %v1440_v9  ;;  %v1395_v28 = vpop.f32.mrb[29].mxu1  ;;  %v3001_v19 = vadd.f32 %v2084_v6, %v1950_v34 }
 0x472   : > { %v2997_v13 = vadd.f32 %v1950_v34, %v1395_v28  ;;  %v2085_v24 = vpop.f32.mrb[30].mxu1 }
 0x473   : > { %v1398_v17 = vpop.f32.mrb[31].mxu1  ;;  %v3007_v31 = vadd.f32 %v2085_v24, %v1950_v34  ;;  %v1452_v50 = vsel %vm720_vm6, %v3001_v19, -inf }
 0x474   : > { %v3003_v23 = vadd.f32 %v1950_v34, %v1398_v17  ;;  %1444 = vmax.xlane.f32.xlu0 %v1443_v18  ;;  %v1446_v27 = vsel %vm720_vm6, %v2997_v13, -inf  ;;  %v1621_v34 = vsel %vm720_vm6, %v1603_v35, 0.0 }
 0x475   : > { %1447 = vmax.xlane.f32.xlu1 %v1446_v27  ;;  %v1455_v25 = vsel %vm720_vm6, %v3007_v31, -inf }
 0x476   : > { %v1449_v32 = vsel %vm720_vm6, %v3003_v23, -inf }
 0x478   : > { %1450 = vmax.xlane.f32.xlu0 %v1449_v32 }
 0x479   : > { %1453 = vmax.xlane.f32.xlu1 %v1452_v50 }
 0x47c   : > { %1456 = vmax.xlane.f32.xlu0 %v1455_v25 }
 0x47d   : > { %1622 = vadd.xlane.f32.xlu1 %v1621_v34 }
 0x480   : > { %1619 = vadd.xlane.f32.xlu0 %v1618_v41 }
 0x481   : > { %1625 = vadd.xlane.f32.xlu1 %v1624_v45 }
 0x485   : > { %1628 = vadd.xlane.f32.xlu1 %v1627_v60 }
 0x4e9   : > { %v3027_v30 = vpop.xlane.xlu0 %1411 }
 0x4ea   : > { %v1458_v47 = vsub.f32 %v2951_v37, %v3027_v30 }
 0x4eb   : > { %v3031_v21 = vpop.xlane.xlu1 %1414 }
 0x4ec   : > { %v1474_v61 = vmul.f32 1.442695, %v1458_v47  ;;  %v1459_v43 = vsub.f32 %v2955_v38, %v3031_v21 }
 0x4ed   : > { %v3033_v29 = vpop.xlane.xlu0 %1417 }
 0x4ee   : > { %v1460_v2 = vsub.f32 %v2953_v42, %v3033_v29  ;;  %v1476_v62 = vmul.f32 1.442695, %v1459_v43 }
 0x4f0   : > { %v1478_v56 = vmul.f32 1.442695, %v1460_v2 }
 0x4f1   : > { %v3039_v0 = vpop.xlane.xlu1 %1423  ;;  %v3041_v51 = vpop.xlane.xlu0 %1420 }
 0x4f2   : > { %2256 = vpow2.f32 %v1478_v56  ;;  %v1461_v37 = vsub.f32 %v2961_v46, %v3041_v51  ;;  %v1462_v53 = vsub.f32 %v2965_v52, %v3039_v0 }
 0x4f3   : > { %2258 = vpow2.f32 %v1474_v61 }
 0x4f4   : > { %v1480_v59 = vmul.f32 1.442695, %v1461_v37  ;;  %v1482_v5 = vmul.f32 1.442695, %v1462_v53 }
 0x4f5   : > { %v3047_v42 = vpop.xlane.xlu1 %1429  ;;  %v3049_v1 = vpop.xlane.xlu0 %1426 }
 0x4f6   : > { %v1464_v38 = vsub.f32 %v2967_v15, %v3047_v42  ;;  %2260 = vpow2.f32 %v1480_v59  ;;  %v1463_v46 = vsub.f32 %v2969_v48, %v3049_v1 }
 0x4f7   : > { %2262 = vpow2.f32 %v1476_v62 }
 0x4f8   : > { %v1486_v26 = vmul.f32 1.442695, %v1464_v38  ;;  %v1484_v17 = vmul.f32 1.442695, %v1463_v46 }
 0x4f9   : > { %v3055_v12 = vpop.xlane.xlu0 %1432 }
 0x4fa   : > { %2264 = vpow2.f32 %v1486_v26  ;;  %v3057_v16 = vpop.xlane.xlu1 %1435  ;;  %v1465_v6 = vsub.f32 %v2975_v49, %v3055_v12 }
 0x4fb   : > { %2266 = vpow2.f32 %v1482_v5  ;;  %v1466_v28 = vsub.f32 %v2981_v63, %v3057_v16  ;;  %v1606_v5 = vmul.f32 %v2727_v58, %v2965_v52 }
 0x4fc   : > { %v2257_v9 = vpop.eup %2256  ;;  %v1488_v24 = vmul.f32 1.442695, %v1465_v6 }
 0x4fd   : > { %v3063_v18 = vpop.xlane.xlu0 %1438  ;;  %v1512_v27 = vsel %vm720_vm6, %v2257_v9, 0.0  ;;  %v2259_v32 = vpop.eup %2258  ;;  %v1490_v25 = vmul.f32 1.442695, %v1466_v28  ;;  %v1630_v58 = vsel %vm720_vm6, %v1606_v5, 0.0 }
 0x4fe   : > { %2268 = vpow2.f32 %v1488_v24  ;;  %v3066_v50 = vpop.xlane.xlu1 %1441  ;;  %1513 = vadd.xlane.f32.xlu1 %v1512_v27  ;;  %v1506_v41 = vsel %vm720_vm6, %v2259_v32, 0.0  ;;  %v1467_v61 = vsub.f32 %v2987_v11, %v3063_v18 }
 0x4ff   : > { %v1468_v35 = vsub.f32 %v2985_v10, %v3066_v50  ;;  %2270 = vpow2.f32 %v1484_v17 }
 0x500   : > { %v2261_v33 = vpop.eup %2260  ;;  %2272 = vpow2.f32 %v1490_v25  ;;  %v1492_v38 = vmul.f32 1.442695, %v1467_v61 }
 0x501   : > { %v1494_v34 = vmul.f32 1.442695, %v1468_v35  ;;  %v3070_v36 = vpop.xlane.xlu0 %1444  ;;  %v1515_v60 = vsel %vm720_vm6, %v2261_v33, 0.0  ;;  %v2263_v47 = vpop.eup %2262  ;;  %v1607_v35 = vmul.f32 %v2724_v57, %v2969_v48 }
 0x502   : > { %v1469_v45 = vsub.f32 %v2991_v14, %v3070_v36  ;;  %v3075_v44 = vpop.xlane.xlu1 %1447  ;;  %1507 = vadd.xlane.f32.xlu1 %v1506_v41  ;;  %1516 = vadd.xlane.f32.xlu0 %v1515_v60  ;;  %v1509_v59 = vsel %vm720_vm6, %v2263_v47, 0.0  ;;  %v1608_v47 = vmul.f32 %v2744_v8, %v2967_v15 }
 0x503   : > { %2274 = vpow2.f32 %v1494_v34  ;;  %v1470_v24 = vsub.f32 %v2997_v13, %v3075_v44  ;;  %v1633_v48 = vsel %vm720_vm6, %v1607_v35, 0.0 }
 0x504   : > { %v2265_v2 = vpop.eup %2264  ;;  %v1496_v56 = vmul.f32 1.442695, %v1469_v45 }
 0x505   : > { %v1524_v43 = vsel %vm720_vm6, %v2265_v2, 0.0  ;;  %v2267_v37 = vpop.eup %2266  ;;  %v3090_v28 = vpop.xlane.xlu0 %1450  ;;  %v1498_v25 = vmul.f32 1.442695, %v1470_v24 }
 0x506   : > { %v3081_v53 = vpop.xlane.xlu1 %1453  ;;  %1525 = vadd.xlane.f32.xlu1 %v1524_v43  ;;  %1510 = vadd.xlane.f32.xlu0 %v1509_v59  ;;  %2276 = vpow2.f32 %v1496_v56  ;;  %v1518_v6 = vsel %vm720_vm6, %v2267_v37, 0.0  ;;  %v1471_v33 = vsub.f32 %v3003_v23, %v3090_v28  ;;  %v1636_v37 = vsel %vm720_vm6, %v1608_v47, 0.0 }
 0x507   : > { %v1472_v26 = vsub.f32 %v3001_v19, %v3081_v53  ;;  %2278 = vpow2.f32 %v1492_v38  ;;  %v1609_v59 = vmul.f32 %v2741_v7, %v2975_v49  ;;  %v1610_v38 = vmul.f32 %v2762_v22, %v2981_v63 }
 0x508   : > { %v2269_v62 = vpop.eup %2268  ;;  %v1500_v2 = vmul.f32 1.442695, %v1471_v33  ;;  %v1612_v7 = vmul.f32 %v2778_v40, %v2985_v10  ;;  %v1614_v22 = vmul.f32 %v2796_v55, %v2997_v13  ;;  %v1616_v40 = vmul.f32 %v2810_v4, %v3001_v19 }
 0x509   : > { %v1527_v46 = vsel %vm720_vm6, %v2269_v62, 0.0  ;;  %v2271_v9 = vpop.eup %2270  ;;  %v1502_v17 = vmul.f32 1.442695, %v1472_v26  ;;  %v3101_v41 = vpop.xlane.xlu0 %1456  ;;  %v1639_v62 = vsel %vm720_vm6, %v1609_v59, 0.0  ;;  %v1613_v13 = vmul.f32 %v2775_v39, %v2991_v14 }
 0x50a   : > { %1519 = vadd.xlane.f32.xlu1 %v1518_v6  ;;  %1528 = vadd.xlane.f32.xlu0 %v1527_v46  ;;  %v2273_v52 = vpop.eup %2272  ;;  %v1521_v27 = vsel %vm720_vm6, %v2271_v9, 0.0  ;;  %v1473_v57 = vsub.f32 %v3007_v31, %v3101_v41  ;;  %v1642_v46 = vsel %vm720_vm6, %v1610_v38, 0.0  ;;  %v1648_v9 = vsel %vm720_vm6, %v1612_v7, 0.0 }
 0x50b   : > { %2280 = vpow2.f32 %v1502_v17  ;;  %v1530_v34 = vsel %vm720_vm6, %v2273_v52, 0.0  ;;  %v1654_v17 = vsel %vm720_vm6, %v1614_v22, 0.0  ;;  %v1660_v52 = vsel %vm720_vm6, %v1616_v40, 0.0 }
 0x50c   : > { %2282 = vpow2.f32 %v1498_v25  ;;  %v1504_v43 = vmul.f32 1.442695, %v1473_v57  ;;  %v1615_v4 = vmul.f32 %v2793_v54, %v3003_v23 }
 0x50d   : > { %v2275_v32 = vpop.eup %2274  ;;  %2284 = vpow2.f32 %v1500_v2  ;;  %v1620_v14 = vpop.xlane.xlu0 %1619 }
 0x50e   : > { %1631 = vadd.xlane.f32.xlu1 %v1630_v58  ;;  %1522 = vadd.xlane.f32.xlu0 %v1521_v27  ;;  %v1536_v45 = vsel %vm720_vm6, %v2275_v32, 0.0  ;;  %2286 = vpow2.f32 %v1504_v43  ;;  %v1611_v58 = vmul.f32 %v2759_v20, %v2987_v11  ;;  %v1651_v27 = vsel %vm720_vm6, %v1613_v13, 0.0  ;;  %v1623_v32 = vpop.xlane.xlu1 %1622 }
 0x50f   : > { %v1657_v19 = vsel %vm720_vm6, %v1615_v4, 0.0  ;;  %v1617_v20 = vmul.f32 %v2807_v3, %v3007_v31 }
 0x510   : > { %v2277_v60 = vpop.eup %2276  ;;  %v1645_v55 = vsel %vm720_vm6, %v1611_v58, 0.0 }
 0x511   : > { %v1539_v61 = vsel %vm720_vm6, %v2277_v60, 0.0  ;;  %v2279_v56 = vpop.eup %2278  ;;  %v1663_v11 = vsel %vm720_vm6, %v1617_v20, 0.0 }
 0x512   : > { %1531 = vadd.xlane.f32.xlu1 %v1530_v34  ;;  %1537 = vadd.xlane.f32.xlu0 %v1536_v45  ;;  %v1533_v8 = vsel %vm720_vm6, %v2279_v56, 0.0  ;;  %v1626_v35 = vpop.xlane.xlu1 %1625 }
 0x515   : > { %v2281_v15 = vpop.eup %2280 }
 0x516   : > { %1634 = vadd.xlane.f32.xlu1 %v1633_v48  ;;  %1540 = vadd.xlane.f32.xlu0 %v1539_v61  ;;  %v1548_v5 = vsel %vm720_vm6, %v2281_v15, 0.0  ;;  %v2283_v26 = vpop.eup %2282  ;;  %v1629_v25 = vpop.xlane.xlu1 %1628 }
 0x517   : > { %v1542_v49 = vsel %vm720_vm6, %v2283_v26, 0.0  ;;  %v2285_v6 = vpop.eup %2284 }
 0x518   : > { %v1545_v63 = vsel %vm720_vm6, %v2285_v6, 0.0  ;;  %v2287_v24 = vpop.eup %2286 }
 0x519   : > { %v1551_v10 = vsel %vm720_vm6, %v2287_v24, 0.0 }
 0x51a   : > { %1637 = vadd.xlane.f32.xlu1 %v1636_v37  ;;  %1534 = vadd.xlane.f32.xlu0 %v1533_v8 }
 0x51e   : > { %1640 = vadd.xlane.f32.xlu1 %v1639_v62  ;;  %1549 = vadd.xlane.f32.xlu0 %v1548_v5 }
 0x522   : > { %1643 = vadd.xlane.f32.xlu1 %v1642_v46  ;;  %1543 = vadd.xlane.f32.xlu0 %v1542_v49 }
 0x526   : > { %1649 = vadd.xlane.f32.xlu1 %v1648_v9  ;;  %1546 = vadd.xlane.f32.xlu0 %v1545_v63 }
 0x52a   : > { %1655 = vadd.xlane.f32.xlu1 %v1654_v17  ;;  %1552 = vadd.xlane.f32.xlu0 %v1551_v10 }
 0x52e   : > { %1661 = vadd.xlane.f32.xlu1 %v1660_v52  ;;  %1646 = vadd.xlane.f32.xlu0 %v1645_v55 }
 0x532   : > { %1652 = vadd.xlane.f32.xlu0 %v1651_v27 }
 0x536   : > { %1658 = vadd.xlane.f32.xlu0 %v1657_v19 }
 0x53a   : > { %1664 = vadd.xlane.f32.xlu0 %v1663_v11 }
 0x58b   : > { %v1514_v39 = vpop.xlane.xlu1 %1513 }
 0x58c   : > { %2288 = vlog2.f32 %v1514_v39 }
 0x58f   : > { %v1508_v33 = vpop.xlane.xlu1 %1507  ;;  %v1517_v34 = vpop.xlane.xlu0 %1516 }
 0x590   : > { %2290 = vlog2.f32 %v1508_v33 }
 0x591   : > { %2292 = vlog2.f32 %v1517_v34 }
 0x593   : > { %v1526_v54 = vpop.xlane.xlu1 %1525  ;;  %v1511_v23 = vpop.xlane.xlu0 %1510 }
 0x594   : > { %2294 = vlog2.f32 %v1511_v23 }
 0x596   : > { %v2289_v3 = vpop.eup %2288 }
 0x597   : > { %v1520_v45 = vpop.xlane.xlu1 %1519  ;;  %v1529_v60 = vpop.xlane.xlu0 %1528  ;;  %v1559_v48 = vmul.f32 0.6931472, %v2289_v3 }
 0x598   : > { %2296 = vlog2.f32 %v1520_v45 }
 0x599   : > { %v1588_v8 = vadd.f32 %v1559_v48, %v3033_v29 }
 0x59a   : > { %v2291_v31 = vpop.eup %2290 }
 0x59b   : > { %v2293_v47 = vpop.eup %2292  ;;  %v1555_v2 = vmul.f32 0.6931472, %v2291_v31  ;;  %v1632_v57 = vpop.xlane.xlu1 %1631  ;;  %v1668_v6 = vsub.f32 %v1588_v8, %v1626_v35 }
 0x59c   : > { %v1523_v61 = vpop.xlane.xlu0 %1522  ;;  %v1561_v56 = vmul.f32 0.6931472, %v2293_v47 }
 0x59d   : > { %2298 = vlog2.f32 %v1523_v61  ;;  %v1586_v43 = vadd.f32 %v1555_v2, %v3027_v30 }
 0x59e   : > { %2300 = vlog2.f32 %v1526_v54  ;;  %v2295_v37 = vpop.eup %2294  ;;  %v1589_v5 = vadd.f32 %v1561_v56, %v3041_v51 }
 0x59f   : > { %v1532_v59 = vpop.xlane.xlu1 %1531  ;;  %v1557_v15 = vmul.f32 0.6931472, %v2295_v37  ;;  %2302 = vlog2.f32 %v1529_v60  ;;  %v1666_v26 = vsub.f32 %v1586_v43, %v1620_v14 }
 0x5a0   : > { %v1538_v62 = vpop.xlane.xlu0 %1537  ;;  %2304 = vlog2.f32 %v1532_v59  ;;  %v1669_v63 = vsub.f32 %v1589_v5, %v1629_v25 }
 0x5a1   : > { %v1587_v46 = vadd.f32 %v1557_v15, %v3031_v21  ;;  %v1683_v29 = vsel %vm1682_vm1, %v1666_v26, 0.0  ;;  %v1686_v21 = vsel %vm1682_vm1, %v1668_v6, 0.0  ;;  %2306 = vlog2.f32 %v1538_v62 }
 0x5a2   : > { %v2297_v38 = vpop.eup %2296  ;;  %v1688_v27 = vsel %vm1682_vm1, %v1669_v63, 0.0 }
 0x5a3   : > { %v1563_v7 = vmul.f32 0.6931472, %v2297_v38  ;;  %v1635_v49 = vpop.xlane.xlu1 %1634  ;;  %v1667_v9 = vsub.f32 %v1587_v46, %v1623_v32 }
 0x5a4   : > { %v1541_v30 = vpop.xlane.xlu0 %1540 }
 0x5a5   : > { %v1590_v22 = vadd.f32 %v1563_v7, %v3039_v0  ;;  %v1684_v24 = vsel %vm1682_vm1, %v1667_v9, 0.0 }
 0x5a6   : > { %v1685_v40 = vadd.f32 %v1684_v24, %v1683_v29 }
 0x5a7   : > { %v2299_v17 = vpop.eup %2298  ;;  %v1638_v51 = vpop.xlane.xlu1 %1637  ;;  %v1670_v13 = vsub.f32 %v1590_v22, %v1632_v57 }
 0x5a8   : > { %v2301_v10 = vpop.eup %2300  ;;  %v1565_v58 = vmul.f32 0.6931472, %v2299_v17  ;;  %v1535_v52 = vpop.xlane.xlu0 %1534  ;;  %v1687_v55 = vadd.f32 %v1686_v21, %v1685_v40 }
 0x5a9   : > { %2308 = vlog2.f32 %v1535_v52  ;;  %v2303_v4 = vpop.eup %2302  ;;  %v1567_v19 = vmul.f32 0.6931472, %v2301_v10  ;;  %v1690_v39 = vsel %vm1682_vm1, %v1670_v13, 0.0 }
 0x5aa   : > { %v1591_v0 = vadd.f32 %v1565_v58, %v3049_v1  ;;  %v1689_v20 = vadd.f32 %v1688_v27, %v1687_v55  ;;  %v2305_v32 = vpop.eup %2304  ;;  %2310 = vlog2.f32 %v1541_v30  ;;  %v1569_v33 = vmul.f32 0.6931472, %v2303_v4 }
 0x5ab   : > { %v1641_v11 = vpop.xlane.xlu1 %1640  ;;  %v1571_v34 = vmul.f32 0.6931472, %v2305_v32  ;;  %v1592_v23 = vadd.f32 %v1567_v19, %v3047_v42  ;;  %v2307_v31 = vpop.eup %2306 }
 0x5ac   : > { %v1671_v35 = vsub.f32 %v1591_v0, %v1635_v49  ;;  %v1550_v25 = vpop.xlane.xlu0 %1549  ;;  %v1691_v14 = vadd.f32 %v1690_v39, %v1689_v20  ;;  %v1593_v47 = vadd.f32 %v1569_v33, %v3055_v12  ;;  %v1575_v42 = vmul.f32 0.6931472, %v2307_v31 }
 0x5ad   : > { %2312 = vlog2.f32 %v1550_v25  ;;  %v1672_v60 = vsub.f32 %v1592_v23, %v1638_v51  ;;  %v1594_v2 = vadd.f32 %v1571_v34, %v3057_v16 }
 0x5ae   : > { %v1692_v54 = vsel %vm1682_vm1, %v1671_v35, 0.0  ;;  %v1673_v56 = vsub.f32 %v1593_v47, %v1641_v11  ;;  %v1596_v7 = vadd.f32 %v1575_v42, %v3066_v50 }
 0x5af   : > { %v1644_v45 = vpop.xlane.xlu1 %1643  ;;  %v1693_v3 = vadd.f32 %v1692_v54, %v1691_v14  ;;  %v1694_v61 = vsel %vm1682_vm1, %v1672_v60, 0.0 }
 0x5b0   : > { %v1544_v1 = vpop.xlane.xlu0 %1543  ;;  %v1674_v8 = vsub.f32 %v1594_v2, %v1644_v45  ;;  %v1696_v38 = vsel %vm1682_vm1, %v1673_v56, 0.0 }
 0x5b1   : > { %2314 = vlog2.f32 %v1544_v1  ;;  %v1695_v43 = vadd.f32 %v1694_v61, %v1693_v3 }
 0x5b2   : > { %v1698_v46 = vsel %vm1682_vm1, %v1674_v8, 0.0 }
 0x5b3   : > { %v2309_v57 = vpop.eup %2308  ;;  %v1650_v37 = vpop.xlane.xlu1 %1649  ;;  %v1697_v12 = vadd.f32 %v1696_v38, %v1695_v43 }
 0x5b4   : > { %v1547_v48 = vpop.xlane.xlu0 %1546  ;;  %v1573_v59 = vmul.f32 0.6931472, %v2309_v57  ;;  %v2311_v15 = vpop.eup %2310  ;;  %v1676_v63 = vsub.f32 %v1596_v7, %v1650_v37 }
 0x5b5   : > { %2316 = vlog2.f32 %v1547_v48  ;;  %v1577_v16 = vmul.f32 0.6931472, %v2311_v15  ;;  %v1699_v24 = vadd.f32 %v1698_v46, %v1697_v12 }
 0x5b6   : > { %v1595_v49 = vadd.f32 %v1573_v59, %v3063_v18  ;;  %v1702_v50 = vsel %vm1682_vm1, %v1676_v63, 0.0 }
 0x5b7   : > { %v2313_v5 = vpop.eup %2312  ;;  %v1656_v9 = vpop.xlane.xlu1 %1655  ;;  %v1597_v10 = vadd.f32 %v1577_v16, %v3070_v36 }
 0x5b8   : > { %v1553_v62 = vpop.xlane.xlu0 %1552  ;;  %v1583_v22 = vmul.f32 0.6931472, %v2313_v5 }
 0x5b9   : > { %2318 = vlog2.f32 %v1553_v62 }
 0x5ba   : > { %v1600_v55 = vadd.f32 %v1583_v22, %v3081_v53 }
 0x5bb   : > { %v2315_v26 = vpop.eup %2314  ;;  %v1662_v27 = vpop.xlane.xlu1 %1661 }
 0x5bc   : > { %v1579_v6 = vmul.f32 0.6931472, %v2315_v26  ;;  %v1647_v30 = vpop.xlane.xlu0 %1646  ;;  %v1680_v35 = vsub.f32 %v1600_v55, %v1662_v27 }
 0x5bd   : > { %v1675_v29 = vsub.f32 %v1595_v49, %v1647_v30 }
 0x5be   : > { %v1598_v17 = vadd.f32 %v1579_v6, %v3075_v44 }
 0x5bf   : > { %v2317_v40 = vpop.eup %2316  ;;  %v1700_v51 = vsel %vm1682_vm1, %v1675_v29, 0.0 }
 0x5c0   : > { %v1581_v58 = vmul.f32 0.6931472, %v2317_v40  ;;  %v1701_v21 = vadd.f32 %v1700_v51, %v1699_v24  ;;  %v1653_v52 = vpop.xlane.xlu0 %1652  ;;  %v1678_v18 = vsub.f32 %v1598_v17, %v1656_v9 }
 0x5c1   : > { %v1677_v13 = vsub.f32 %v1597_v10, %v1653_v52 }
 0x5c2   : > { %v1703_v0 = vadd.f32 %v1702_v50, %v1701_v21  ;;  %v1599_v4 = vadd.f32 %v1581_v58, %v3090_v28  ;;  %v1706_v36 = vsel %vm1682_vm1, %v1678_v18, 0.0  ;;  %v1710_v28 = vsel %vm1682_vm1, %v1680_v35, 0.0 }
 0x5c3   : > { %v2319_v19 = vpop.eup %2318  ;;  %v1704_v44 = vsel %vm1682_vm1, %v1677_v13, 0.0 }
 0x5c4   : > { %v1585_v20 = vmul.f32 0.6931472, %v2319_v19  ;;  %v1705_v11 = vadd.f32 %v1704_v44, %v1703_v0  ;;  %v1659_v32 = vpop.xlane.xlu0 %1658 }
 0x5c5   : > { %v1679_v25 = vsub.f32 %v1599_v4, %v1659_v32 }
 0x5c6   : > { %v1707_v39 = vadd.f32 %v1706_v36, %v1705_v11  ;;  %v1601_v14 = vadd.f32 %v1585_v20, %v3101_v41 }
 0x5c7   : > { %v1708_v53 = vsel %vm1682_vm1, %v1679_v25, 0.0 }
 0x5c8   : > { %v1709_v33 = vadd.f32 %v1708_v53, %v1707_v39  ;;  %v1665_v34 = vpop.xlane.xlu0 %1664 }
 0x5c9   : > { %v1681_v54 = vsub.f32 %v1601_v14, %v1665_v34 }
 0x5ca   : > { %v1711_v23 = vadd.f32 %v1710_v28, %v1709_v33 }
 0x5cb   : > { %v1712_v1 = vsel %vm1682_vm1, %v1681_v54, 0.0 }
 0x5cc   : > { %v1713_v45 = vadd.f32 %v1712_v1, %v1711_v23 }
 0x5ce   : > { %1714 = vadd.xlane.f32.xlu1 %v1713_v45 }
 0x65b   : > { %v1715_v60 = vpop.xlane.xlu1 %1714 }
 0x65c   : > { %v1716_v3 = vrot.slane %v1715_v60, 4 }
 0x65e   : > { %v1717_v31 = vadd.f32 %v1716_v3, %v1715_v60 }
 0x660   : > { %v1718_v47 = vrot.slane %v1717_v31, 2 }
 0x662   : > { %v1719_v2 = vadd.f32 %v1718_v47, %v1717_v31 }
 0x664   : > { %v1720_v41 = vrot.slane %v1719_v2, 1 }
 0x666   : > { %v1721_v57 = vadd.f32 %v1720_v41, %v1719_v2 }
 0x668   : > { %2086 = vpush %v1721_v57 }
 0x699   : > { %s2087_s22 = spop %2086 }
 0x69a   : > { %v1729_v48 = vstv %s2087_s22 }
 0x69b   : > { %1731 = vst [vmem:[%s485_s20] sm:$0xff] %v1729_v48 }
 0x69c   : > { %2363 = shalt.err (!%p2360_p13)
}
 0x69d   : > { %s2364_s28 = scalar_lea.hbm %s3180_s21, 128  ;;  %s2368_s22 = scalar_lea.hbm %s3244_s11, 512 }
 0x69e   : > { %p2365_p1 = scmp.ne.s32.totalorder %s3180_s21, %s2364_s28  ;;  %p2369_p6 = scmp.lt.u32.totalorder %s3180_s21, %s3244_s11 }
 0x69f   : > { %p2370_p3 = scmp.lt.u32.totalorder %s2368_s22, %s2364_s28  ;;  %p2372_p10 = scmp.lt.u32.totalorder %s2364_s28, %s3180_s21 }
 0x6a0   : > { %p2366_p4 = pnand %p2365_p1, %p3266_p12 }
 0x6a1   : > { %p2371_p8 = por %p2370_p3, %p2369_p6 }
 0x6a2   : > { %p2367_p5 = pneg %p2366_p4 }
 0x6a3   : > { %p2373_p0 = por %p2372_p10, %p2371_p8 }
 0x6a5   : > { %p2374_p2 = pnand %p2373_p0, %p2367_p5 }
 0x6a7   : > { %2377 = shalt.err (!%p2374_p2)
}
 0x6a8   : > { %2096 = dma.vmem_to_hbm [thread:$0]  (%p3266_p12), %s3182_s15, 128, %s3180_s21, %s1733_s25  }
 0x6a9 PF: > { %s3267_s29 = sld [smem:[#allocation11_spill]]  ;;  %s3268_s13 = sld [smem:[#allocation15_spill]] }
 0x6aa   : > { %p2113_p7 = scmp.ge.s32.totalorder %s2452_s24, 2 }
 0x6af   : > { %s1760_s26 = sand.u32 1, %s3267_s29   ;;  %p3269_p9 = scmp.ne.s32.totalorder %s3268_s13, 0 }
 0x6b0   : > { %s1761_s27 = scalar_lea.sflag [#allocation3], %s1760_s26 }
 0x6b1   : > { %p2106_p11 = pnand %p2113_p7, %p3269_p9 }
 0x6b3   : > { %2419 = dma.done.wait (!%p2106_p11), %s1761_s27, 128  }
 0x6b4   : > { %2421 = vsyncadd (!%p2106_p11), %s1761_s27, 4294967168  ;;  %s26_s24 = sadd.s32 1, %s2452_s24   ;;  %s3270_s12 = smov %s2601_s17 }
 0x6b5   : > { %p23_p13 = scmp.ge.s32.totalorder %s26_s24, 6   ;;  %s3271_s20 = sld [smem:[#allocation12_spill]] }
 0x6b6   : > { %s3272_s22 = sld [smem:[#allocation13_spill]]  ;;  %s3273_s15 = sld [smem:[#allocation14_spill]] }
 0x6b7   : > { %s3274_s17 = smov %s2428_s18  ;;  %s3275_s18 = smov %s2432_s19 }
 0x6b8   : > { %s3276_s19 = smov %s3270_s12  ;;  %s3277_s21 = smov %s2448_s23 }
 0x6b9   :  { %25 = sbr.rel (!%p23_p13) target bundleno = 7 (0x7), region = 118 }
 0x6bc   : > { %s3278_s23 = smov %s3273_s15 }
 0x6c0   :  { %1766 = vsyncpa [#allocation3], 1 }
 0x6c1   :  { %1768 = vsyncpa [#allocation3 + $0x1], 1 }
 0x6c2   :  { %1769 = vsyncpa [#allocation4], 1 }
 0x6c3   :  { %1771 = vsyncpa [#allocation4 + $0x1], 1 }
 0x6c4   :  { %1772 = vsyncpa [#allocation6], 1 }

</bundles_post_ra>
